<compile_context>
chip_gen: v7x
topology: tpu7x:2x2x1
jax: 0.10.0
libtpu: 0.0.40
codegen_flags: <defaults>
</compile_context>

<pallas_src>
import math

import numpy as np
import jax
import jax.numpy as jnp
from jax.experimental import pallas as pl
from jax.experimental.pallas import tpu as pltpu


_PI = math.pi
_PI_2 = math.pi / 2.0
_PI_4 = math.pi / 4.0
_TAN_3PI_8 = 2.414213562373095
_TAN_PI_8 = 0.41421356237309503


def _atan2(y, x):
    """f32 atan2 with ONE approximate (EUP) reciprocal + Cephes poly.

    Branch selection is done on (num, den) pairs with compares first, so the
    only division is num * pl.reciprocal(den, approx=True) (EUP slot, nearly
    free).  Matches torch.atan2 up to signed-zero conventions (y == -0.0 with
    x < 0 returns +pi instead of -pi).  Kernel-only (uses pl.reciprocal).
    """
    ax = jnp.abs(x)
    ay = jnp.abs(y)
    big = ay > _TAN_3PI_8 * ax
    mid = jnp.logical_and(jnp.logical_not(big), ay > _TAN_PI_8 * ax)
    num = jnp.where(big, -ax, jnp.where(mid, ay - ax, ay))
    den = jnp.where(big, ay, jnp.where(mid, ay + ax, ax))
    off = jnp.where(big, _PI_2, jnp.where(mid, _PI_4, 0.0))
    den = jnp.where(den > 0.0, den, 1.0)
    z = num * pl.reciprocal(den, approx=True)          # the single divide
    s = z * z
    p = ((8.05374449538e-2 * s - 1.38776856032e-1) * s
         + 1.99777106478e-1) * s - 3.33329491539e-1
    t = off + (p * s * z + z)                          # atan(|y|/|x|) in [0, pi/2)
    t = jnp.where(x < 0.0, _PI - t, t)                 # quadrants II / III
    t = jnp.where(ax == 0.0, _PI_2, t)                 # x == 0 -> +-pi/2
    t = jnp.where(y < 0.0, -t, t)                      # lower half-plane
    t = jnp.where(ay == 0.0, jnp.where(x < 0.0, _PI, 0.0), t)  # y == 0
    return t


# ---------------------------------------------------------------------------
# Pallas kernel factory: one fused MXU matmul + only the requested features.
# ---------------------------------------------------------------------------
def _make_stft_kernel(Fp, need_cat, need_lin, need_ph, cat_f32):
    def kernel(frames_ref, basis_ref, *out_refs):
        # frames: (tm, n_fft) bf16, basis: (n_fft, 2*Fp) bf16 == [w*cos | -w*sin]
        out = jnp.dot(frames_ref[...], basis_ref[...],
                      preferred_element_type=jnp.float32)      # (tm, 2*Fp) f32
        i = 0
        re = im = None
        if need_cat:
            cat_ref = out_refs[i]; i += 1
            cat_ref[...] = out.astype(cat_ref.dtype)            # [re | im] lane-dense
            if cat_f32 and (need_lin or need_ph):
                # re-read the lane-aligned halves from the just-written ref so
                # the (tm, 2*Fp) f32 temp need not stay live (single live copy).
                re = cat_ref[:, :Fp]
                im = cat_ref[:, Fp:]
        if (need_lin or need_ph) and re is None:
            re = out[:, :Fp]
            im = out[:, Fp:]
        if need_lin:
            lin_ref = out_refs[i]; i += 1
            lin_ref[...] = jnp.sqrt(re * re + im * im).astype(lin_ref.dtype)
        if need_ph:
            ph_ref = out_refs[i]; i += 1
            ph_ref[...] = _atan2(im, re).astype(ph_ref.dtype)
    return kernel


def _num_tensorcores():
    """TensorCores per chip: v7x / v4 / v5p have 2, inference chips have 1."""
    try:
        kind = jax.devices()[0].device_kind.lower()
    except Exception:
        return 1
    return 2 if any(v in kind for v in ("v7", "v4", "v5p")) else 1


def _pick_tm(n_rows, num_tc=1, tm_max=512, tm_min=32):
    """Row-tile size.

    Large tiles amortize the ~0.35us/step grid overhead and keep the MXU busy.
    The tile is capped at the 32-aligned row count (short inputs are not padded
    through the MXU) and, only on multi-TensorCore chips, shrunk until the grid
    has >= 2 balanced steps per core.
    """
    rows32 = -(-n_rows // tm_min) * tm_min
    tm = max(tm_min, min(tm_max, rows32))
    min_steps = 2 * num_tc if num_tc > 1 else 1
    while tm > tm_min and -(-n_rows // tm) < min_steps:
        tm = max(tm_min, (tm // 2) // tm_min * tm_min)
    return tm


def _vmem_limit_bytes(tm, n_fft, w2, out_row_bytes):
    frames_b = tm * n_fft * 2 * 2          # bf16 frames tile, double buffered
    basis_b = n_fft * w2 * 2 * 2           # bf16 basis (conservatively 2 buffers)
    outs_b = tm * out_row_bytes * 2        # output tiles, double buffered
    need = frames_b + basis_b + outs_b
    # real footprint + headroom; never request the whole physical VMEM
    # (v7x only has 64 MiB per TensorCore).
    return int(min(32 << 20, max(16 << 20, 2 * need + (2 << 20))))


_BASIS_SINGLE_BUF_OK = [True]   # flipped off if this jax build rejects Buffered(1)


def stft_features(frames, basis, tm, need_cat, need_lin, need_ph,
                  cat_dtype=jnp.float32, sp_dtype=jnp.float32):
    """frames: (R, n_fft) bf16; basis: (n_fft, 2*Fp) bf16 (window baked in).

    Returns a dict with only the requested features:
      'complx' -> (R, 2*Fp)  [re | im] blocks
      'linear' -> (R, Fp)    sqrt(re^2 + im^2)
      'phase'  -> (R, Fp)    atan2(im, re)
    """
    R, n_fft = frames.shape
    W2 = basis.shape[1]
    Fp = W2 // 2
    Rp = pl.cdiv(R, tm) * tm
    if Rp != R:
        # TODO(synk): frame directly into an Rp-row buffer (or frame in-kernel
        # from the padded wav) to kill this extra copy on the HBM-bound path.
        frames = jnp.pad(frames, ((0, Rp - R), (0, 0)))

    out_shape, out_specs, names = [], [], []
    out_row_bytes = 0

    def add(name, width, dtype):
        nonlocal out_row_bytes
        out_shape.append(jax.ShapeDtypeStruct((Rp, width), dtype))
        out_specs.append(pl.BlockSpec((tm, width), lambda i: (i, 0)))
        names.append(name)
        out_row_bytes += width * np.dtype(dtype).itemsize

    if need_cat:
        add("complx", W2, cat_dtype)
    if need_lin:
        add("linear", Fp, sp_dtype)
    if need_ph:
        add("phase", Fp, sp_dtype)

    kernel = _make_stft_kernel(
        Fp, need_cat, need_lin, need_ph,
        cat_f32=(np.dtype(cat_dtype) == np.dtype(jnp.float32)))
    vmem = _vmem_limit_bytes(tm, n_fft, W2, out_row_bytes)

    def build(single_buffer_basis):
        basis_kwargs = (dict(pipeline_mode=pl.Buffered(1))
                        if single_buffer_basis else {})
        return pl.pallas_call(
            kernel,
            out_shape=tuple(out_shape),
            grid_spec=pltpu.PrefetchScalarGridSpec(
                num_scalar_prefetch=0,
                grid=(Rp // tm,),
                in_specs=[
                    pl.BlockSpec((tm, n_fft), lambda i: (i, 0)),
                    # constant index_map -> the fused basis is DMA'd once and
                    # stays resident across the whole grid.
                    pl.BlockSpec((n_fft, W2), lambda i: (0, 0), **basis_kwargs),
                ],
                out_specs=tuple(out_specs)),
            compiler_params=pltpu.CompilerParams(
                dimension_semantics=("parallel",),
                vmem_limit_bytes=vmem),
        )

    if _BASIS_SINGLE_BUF_OK[0]:
        try:
            outs = build(True)(frames, basis)
        except Exception:
            _BASIS_SINGLE_BUF_OK[0] = False
            outs = build(False)(frames, basis)
    else:
        outs = build(False)(frames, basis)

    return {name: o[:R] for name, o in zip(names, outs)}


# ---------------------------------------------------------------------------
# JAX port of OnlinePreprocessor.forward
# ---------------------------------------------------------------------------
class OnlinePreprocessorJAX:
    def __init__(self, sample_rate=16000, win_len=512, hop_len=256, n_freq=257,
                 feat_list=None, out_dtype=jnp.float32, key=None):
        n_fft = (n_freq - 1) * 2
        assert win_len == n_fft, "this port assumes win_length == n_fft (default config)"
        self.n_fft = n_fft
        self.hop = hop_len
        self.n_freq = n_freq
        self.feat_list = feat_list
        # f32 default matches torch; bfloat16 halves kernel write traffic on the
        # HBM-write-bound v5e/v6e path (features are cast back to f32 post-hoc).
        self.out_dtype = out_dtype
        self._num_tc = _num_tensorcores()

        # periodic Hann window == torch.hann_window(win_len)
        n = jnp.arange(win_len, dtype=jnp.float32)
        window = 0.5 * (1.0 - jnp.cos(2.0 * math.pi * n / win_len))
        self.window = window

        # deterministic pseudo wav buffer (stand-in for the torch.randn buffer)
        key = jax.random.PRNGKey(0) if key is None else key
        self._pseudo_wav = jax.random.normal(key, (2, 2, sample_rate), jnp.float32)

        # Fused onesided real-DFT basis with the analysis window baked in:
        #   out = frames @ [w*cos | -w*sin]  ->  re = out[:, :Fp], im = out[:, Fp:]
        # Freq axis padded to the 128-lane width so every in-kernel slice and
        # store stays lane-aligned / lane-dense.
        nn = jnp.arange(n_fft, dtype=jnp.float32)[:, None]
        ff = jnp.arange(n_freq, dtype=jnp.float32)[None, :]
        ang = 2.0 * math.pi * nn * ff / n_fft
        cos_b = jnp.cos(ang) * window[:, None]
        sin_b = -jnp.sin(ang) * window[:, None]
        Fp = ((n_freq + 127) // 128) * 128
        self._Fp = Fp
        basis = jnp.zeros((n_fft, 2 * Fp), jnp.float32)
        basis = basis.at[:, :n_freq].set(cos_b)
        basis = basis.at[:, Fp:Fp + n_freq].set(sin_b)
        # bf16 MXU operands (f32 accumulation in-kernel).
        # TODO(synk): keep the basis f32 if downstream needs tight phase on
        # near-zero bins (the kernel is not MXU-bound, so f32 matmul is cheap).
        self.basis = basis.astype(jnp.bfloat16)

    def forward(self, wavs=None, feat_list=None):
        feat_list = feat_list if feat_list is not None else self.feat_list
        assert isinstance(feat_list, list)
        if wavs is None:
            # TODO(synk): torch's expand(-1, max_channel_id + 1, -1) pseudo-wav
            # path is not replicated; the registered buffer is used as-is.
            wavs = self._pseudo_wav
        assert wavs.ndim >= 3

        # static info from feat_list: which features / channels are needed
        feat_types = {args["feat_type"] for args in feat_list}
        need_cat = "complx" in feat_types
        need_lin = "linear" in feat_types
        need_ph = "phase" in feat_types

        # only push the referenced channels through framing + kernel
        C = wavs.shape[-2]
        req_channels = sorted({int(args.get("channel", 0)) for args in feat_list})
        chan_map = None
        if len(req_channels) < C:
            wavs = jnp.take(wavs, jnp.asarray(req_channels), axis=-2)
            chan_map = {c: i for i, c in enumerate(req_channels)}

        shape = wavs.shape
        T = shape[-1]
        lead = shape[:-1]                                    # (..., C_used)

        # framing with center=True, reflect padding, done in bf16 so the framed
        # copy and the kernel's input DMA are half-width.
        flat = wavs.reshape(-1, T).astype(jnp.bfloat16)
        pad = self.n_fft // 2
        padded = jnp.pad(flat, ((0, 0), (pad, pad)), mode="reflect")
        n_frames = 1 + (T + 2 * pad - self.n_fft) // self.hop
        if self.n_fft == 2 * self.hop and T % self.hop == 0:
            # hop == n_fft/2: every frame is two adjacent hop-sized chunks, so
            # framing is a reshape + concat (no gather op).
            halves = padded.reshape(flat.shape[0], -1, self.hop)
            frames = jnp.concatenate([halves[:, :-1, :], halves[:, 1:, :]], axis=-1)
            frames = frames.reshape(-1, self.n_fft)
        else:
            idx = (jnp.arange(n_frames)[:, None] * self.hop
                   + jnp.arange(self.n_fft)[None, :])
            frames = padded[:, idx].reshape(-1, self.n_fft)

        R = frames.shape[0]
        tm = _pick_tm(R, self._num_tc)

        # ---- hot path: one fused Pallas kernel, specialized on feat_list ----
        feats = stft_features(frames, self.basis, tm, need_cat, need_lin, need_ph,
                              cat_dtype=self.out_dtype, sp_dtype=self.out_dtype)

        Fp = self._Fp
        variables = {}
        if need_cat:
            variables["complx"] = feats["complx"].reshape(lead + (n_frames, 2 * Fp))
        if need_lin:
            variables["linear"] = feats["linear"].reshape(lead + (n_frames, Fp))
        if need_ph:
            variables["phase"] = feats["phase"].reshape(lead + (n_frames, Fp))

        def select_feat(feat_type, channel=0, log=False):
            ch = chan_map[int(channel)] if chan_map is not None else int(channel)
            raw = jnp.take(variables[feat_type], ch, axis=-3)    # pick channel
            if feat_type == "complx":
                # per-frequency [re_f, im_f] interleave done in plain JAX on the
                # selected channel only (cross-lane interleave kept out of the
                # kernel for lowering safety).
                re = raw[..., :self.n_freq]
                im = raw[..., Fp:Fp + self.n_freq]
                raw = jnp.stack([re, im], axis=-1).reshape(
                    raw.shape[:-1] + (2 * self.n_freq,))
            else:
                raw = raw[..., :self.n_freq]
            raw = raw.astype(jnp.float32)
            if bool(log):
                raw = jnp.log(raw + 1e-10)
            return raw

        return [select_feat(**args) for args in feat_list]


if __name__ == "__main__":
    key = jax.random.PRNGKey(0)
    B, C, T = 2, 2, 512
    win_len, hop_len, n_freq = 128, 64, 65
    wavs = jax.random.normal(key, (B, C, T), jnp.float32)

    prep = OnlinePreprocessorJAX(sample_rate=T, win_len=win_len,
                                 hop_len=hop_len, n_freq=n_freq)
    feat_list = [
        {"feat_type": "complx", "channel": 0},
        {"feat_type": "linear", "channel": 1, "log": True},
        {"feat_type": "phase", "channel": 1},
    ]
    feats = prep.forward(wavs, feat_list)
    feats = [jax.block_until_ready(f) for f in feats]

    n_frames = 1 + T // hop_len
    assert feats[0].shape == (B, n_frames, 2 * n_freq)
    assert feats[1].shape == (B, n_frames, n_freq)
    assert feats[2].shape == (B, n_frames, n_freq)

    # plain-JAX reference on the same bf16 operands (apples-to-apples with the
    # bf16 MXU + f32 accumulation used in the kernel).
    pad = prep.n_fft // 2
    padded = jnp.pad(wavs.reshape(-1, T).astype(jnp.bfloat16),
                     ((0, 0), (pad, pad)), mode="reflect")
    idx = jnp.arange(n_frames)[:, None] * hop_len + jnp.arange(prep.n_fft)[None, :]
    frames_ref = padded[:, idx].reshape(-1, prep.n_fft).astype(jnp.float32)
    basis_f32 = prep.basis.astype(jnp.float32)
    re_ref = (frames_ref @ basis_f32[:, :n_freq]).reshape(B, C, n_frames, n_freq)
    im_ref = (frames_ref @ basis_f32[:, prep._Fp:prep._Fp + n_freq]).reshape(
        B, C, n_frames, n_freq)
    lin_ref = jnp.sqrt(re_ref ** 2 + im_ref ** 2)

    # complx (channel 0): interleaved [re_f0, im_f0, re_f1, im_f1, ...]
    complx_ref = jnp.stack([re_ref[:, 0], im_ref[:, 0]], axis=-1).reshape(
        B, n_frames, 2 * n_freq)
    assert jnp.allclose(feats[0], complx_ref, atol=5e-2)

    # log-linear (channel 1): compare in the linear domain (robust near log(0))
    assert jnp.allclose(jnp.exp(feats[1]) - 1e-10, lin_ref[:, 1], atol=5e-2)

    # phase (channel 1): cos/sin consistency check (robust at the +-pi wrap)
    ph_k = feats[2]
    assert jnp.allclose(lin_ref[:, 1] * jnp.cos(ph_k), re_ref[:, 1], atol=5e-2)
    assert jnp.allclose(lin_ref[:, 1] * jnp.sin(ph_k), im_ref[:, 1], atol=5e-2)

    # feat_list specialization: phase-only request runs a kernel variant that
    # skips the complx/linear stores (and only pushes channel 1 through).
    (ph_only,) = prep.forward(wavs, [{"feat_type": "phase", "channel": 1}])
    ph_only = jax.block_until_ready(ph_only)
    assert jnp.allclose(ph_only, ph_k, atol=1e-4)

    # bf16-output mode (for the write-bound v5e/v6e path): runs and stays close.
    prep_bf16 = OnlinePreprocessorJAX(sample_rate=T, win_len=win_len,
                                      hop_len=hop_len, n_freq=n_freq,
                                      out_dtype=jnp.bfloat16)
    (lin_bf16,) = prep_bf16.forward(wavs, [{"feat_type": "linear", "channel": 1}])
    lin_bf16 = jax.block_until_ready(lin_bf16)
    assert jnp.allclose(lin_bf16, lin_ref[:, 1], atol=5e-2, rtol=2e-2)

    print("KERNEL_OK")
</pallas_src>

<mosaic_0001>
module attributes {stable_mosaic.version = 11 : i64} {
  func.func @kernel(%arg0: i32, %arg1: memref<64x128xbf16, #tpu.memory_space<vmem>>, %arg2: memref<128x256xbf16, #tpu.memory_space<vmem>>, %arg3: memref<64x256xf32, #tpu.memory_space<vmem>>, %arg4: memref<64x128xf32, #tpu.memory_space<vmem>>, %arg5: memref<64x128xf32, #tpu.memory_space<vmem>>) attributes {dimension_semantics = [#tpu.dimension_semantics<parallel>], iteration_bounds = array<i64: 1>, scalar_prefetch = 0 : i64, scratch_operands = 0 : i64, tpu.core_type = #tpu.core_type<tc>, window_params = [{transform_indices = @transform_0, window_bounds = array<i64: 64, 128>}, {pipeline_mode = #tpu.pipeline_mode<synchronous>, transform_indices = @transform_1, window_bounds = array<i64: 128, 256>}, {transform_indices = @transform_2, window_bounds = array<i64: 64, 256>}, {transform_indices = @transform_3, window_bounds = array<i64: 64, 128>}, {transform_indices = @transform_4, window_bounds = array<i64: 64, 128>}]} {
    %c0 = arith.constant 0 : index
    %c0_0 = arith.constant 0 : index
    %0 = vector.load %arg1[%c0, %c0_0] : memref<64x128xbf16, #tpu.memory_space<vmem>>, vector<64x128xbf16>
    %c0_1 = arith.constant 0 : index
    %c0_2 = arith.constant 0 : index
    %1 = vector.load %arg2[%c0_1, %c0_2] : memref<128x256xbf16, #tpu.memory_space<vmem>>, vector<128x256xbf16>
    %cst = arith.constant dense<0.000000e+00> : vector<64x256xf32>
    %2 = tpu.matmul %0, %1, %cst {dimension_numbers = #tpu.dot_dimension_numbers<[1], [0], [0], [1], [0, 0, 1, 1], [], []>} : vector<64x128xbf16>, vector<128x256xbf16>, vector<64x256xf32> -> vector<64x256xf32>
    %c0_3 = arith.constant 0 : index
    %c0_4 = arith.constant 0 : index
    %3 = vector.load %arg3[%c0_3, %c0_4] : memref<64x256xf32, #tpu.memory_space<vmem>>, vector<64x256xf32>
    tpu.vector_store %arg3[%c0_3, %c0_4], %2 {strides = array<i32>} : memref<64x256xf32, #tpu.memory_space<vmem>>, vector<64x256xf32>,
    %c0_5 = arith.constant 0 : index
    %c0_6 = arith.constant 0 : index
    %4 = vector.load %arg3[%c0_5, %c0_6] : memref<64x256xf32, #tpu.memory_space<vmem>>, vector<64x128xf32>
    %c0_7 = arith.constant 0 : index
    %c128 = arith.constant 128 : index
    %5 = vector.load %arg3[%c0_7, %c128] : memref<64x256xf32, #tpu.memory_space<vmem>>, vector<64x128xf32>
    %6 = arith.mulf %4, %4 : vector<64x128xf32>
    %7 = arith.mulf %5, %5 : vector<64x128xf32>
    %8 = arith.addf %6, %7 : vector<64x128xf32>
    %9 = math.sqrt %8 : vector<64x128xf32>
    %c0_8 = arith.constant 0 : index
    %c0_9 = arith.constant 0 : index
    %10 = vector.load %arg4[%c0_8, %c0_9] : memref<64x128xf32, #tpu.memory_space<vmem>>, vector<64x128xf32>
    tpu.vector_store %arg4[%c0_8, %c0_9], %9 {strides = array<i32>} : memref<64x128xf32, #tpu.memory_space<vmem>>, vector<64x128xf32>,
    %11 = math.absf %4 : vector<64x128xf32>
    %12 = math.absf %5 : vector<64x128xf32>
    %cst_10 = arith.constant 2.41421366 : f32
    %13 = vector.broadcast %cst_10 : f32 to vector<64x128xf32>
    %14 = arith.mulf %13, %11 : vector<64x128xf32>
    %15 = arith.cmpf ogt, %12, %14 : vector<64x128xf32>
    %cst_11 = arith.constant dense<true> : vector<64x128xi1>
    %16 = arith.xori %15, %cst_11 : vector<64x128xi1>
    %cst_12 = arith.constant 0.414213568 : f32
    %17 = vector.broadcast %cst_12 : f32 to vector<64x128xf32>
    %18 = arith.mulf %17, %11 : vector<64x128xf32>
    %19 = arith.cmpf ogt, %12, %18 : vector<64x128xf32>
    %20 = arith.andi %16, %19 : vector<64x128xi1>
    %cst_13 = arith.constant 0.000000e+00 : f32
    %21 = vector.broadcast %cst_13 : f32 to vector<64x128xf32>
    %22 = arith.subf %21, %11 : vector<64x128xf32>
    %23 = arith.subf %12, %11 : vector<64x128xf32>
    %24 = arith.select %20, %23, %12 : vector<64x128xi1>, vector<64x128xf32>
    %25 = arith.select %15, %22, %24 : vector<64x128xi1>, vector<64x128xf32>
    %26 = arith.addf %12, %11 : vector<64x128xf32>
    %27 = arith.select %20, %26, %11 : vector<64x128xi1>, vector<64x128xf32>
    %28 = arith.select %15, %12, %27 : vector<64x128xi1>, vector<64x128xf32>
    %cst_14 = arith.constant 0.785398185 : f32
    %cst_15 = arith.constant 0.000000e+00 : f32
    %29 = vector.broadcast %cst_14 : f32 to vector<64x128xf32>
    %30 = vector.broadcast %cst_15 : f32 to vector<64x128xf32>
    %31 = arith.select %20, %29, %30 : vector<64x128xi1>, vector<64x128xf32>
    %cst_16 = arith.constant 1.57079637 : f32
    %32 = vector.broadcast %cst_16 : f32 to vector<64x128xf32>
    %33 = arith.select %15, %32, %31 : vector<64x128xi1>, vector<64x128xf32>
    %cst_17 = arith.constant 0.000000e+00 : f32
    %34 = vector.broadcast %cst_17 : f32 to vector<64x128xf32>
    %35 = arith.cmpf ogt, %28, %34 : vector<64x128xf32>
    %cst_18 = arith.constant 1.000000e+00 : f32
    %36 = vector.broadcast %cst_18 : f32 to vector<64x128xf32>
    %37 = arith.select %35, %28, %36 : vector<64x128xi1>, vector<64x128xf32>
    %38 = tpu.reciprocal %37 {approx = true} : vector<64x128xf32> -> vector<64x128xf32>
    %39 = arith.mulf %25, %38 : vector<64x128xf32>
    %40 = arith.mulf %39, %39 : vector<64x128xf32>
    %cst_19 = arith.constant 0.0805374458 : f32
    %41 = vector.broadcast %cst_19 : f32 to vector<64x128xf32>
    %42 = arith.mulf %41, %40 : vector<64x128xf32>
    %cst_20 = arith.constant 0.138776854 : f32
    %43 = vector.broadcast %cst_20 : f32 to vector<64x128xf32>
    %44 = arith.subf %42, %43 : vector<64x128xf32>
    %45 = arith.mulf %44, %40 : vector<64x128xf32>
    %cst_21 = arith.constant 0.199777111 : f32
    %46 = vector.broadcast %cst_21 : f32 to vector<64x128xf32>
    %47 = arith.addf %45, %46 : vector<64x128xf32>
    %48 = arith.mulf %47, %40 : vector<64x128xf32>
    %cst_22 = arith.constant 0.333329499 : f32
    %49 = vector.broadcast %cst_22 : f32 to vector<64x128xf32>
    %50 = arith.subf %48, %49 : vector<64x128xf32>
    %51 = arith.mulf %50, %40 : vector<64x128xf32>
    %52 = arith.mulf %51, %39 : vector<64x128xf32>
    %53 = arith.addf %52, %39 : vector<64x128xf32>
    %54 = arith.addf %33, %53 : vector<64x128xf32>
    %cst_23 = arith.constant 0.000000e+00 : f32
    %55 = vector.broadcast %cst_23 : f32 to vector<64x128xf32>
    %56 = arith.cmpf olt, %4, %55 : vector<64x128xf32>
    %cst_24 = arith.constant 3.14159274 : f32
    %57 = vector.broadcast %cst_24 : f32 to vector<64x128xf32>
    %58 = arith.subf %57, %54 : vector<64x128xf32>
    %59 = arith.select %56, %58, %54 : vector<64x128xi1>, vector<64x128xf32>
    %cst_25 = arith.constant 0.000000e+00 : f32
    %60 = vector.broadcast %cst_25 : f32 to vector<64x128xf32>
    %61 = arith.cmpf oeq, %11, %60 : vector<64x128xf32>
    %cst_26 = arith.constant 1.57079637 : f32
    %62 = vector.broadcast %cst_26 : f32 to vector<64x128xf32>
    %63 = arith.select %61, %62, %59 : vector<64x128xi1>, vector<64x128xf32>
    %cst_27 = arith.constant 0.000000e+00 : f32
    %64 = vector.broadcast %cst_27 : f32 to vector<64x128xf32>
    %65 = arith.cmpf olt, %5, %64 : vector<64x128xf32>
    %cst_28 = arith.constant 0.000000e+00 : f32
    %66 = vector.broadcast %cst_28 : f32 to vector<64x128xf32>
    %67 = arith.subf %66, %63 : vector<64x128xf32>
    %68 = arith.select %65, %67, %63 : vector<64x128xi1>, vector<64x128xf32>
    %cst_29 = arith.constant 0.000000e+00 : f32
    %69 = vector.broadcast %cst_29 : f32 to vector<64x128xf32>
    %70 = arith.cmpf oeq, %12, %69 : vector<64x128xf32>
    %cst_30 = arith.constant 0.000000e+00 : f32
    %71 = vector.broadcast %cst_30 : f32 to vector<64x128xf32>
    %72 = arith.cmpf olt, %4, %71 : vector<64x128xf32>
    %cst_31 = arith.constant 3.14159274 : f32
    %cst_32 = arith.constant 0.000000e+00 : f32
    %73 = vector.broadcast %cst_31 : f32 to vector<64x128xf32>
    %74 = vector.broadcast %cst_32 : f32 to vector<64x128xf32>
    %75 = arith.select %72, %73, %74 : vector<64x128xi1>, vector<64x128xf32>
    %76 = arith.select %70, %75, %68 : vector<64x128xi1>, vector<64x128xf32>
    %c0_33 = arith.constant 0 : index
    %c0_34 = arith.constant 0 : index
    %77 = vector.load %arg5[%c0_33, %c0_34] : memref<64x128xf32, #tpu.memory_space<vmem>>, vector<64x128xf32>
    tpu.vector_store %arg5[%c0_33, %c0_34], %76 {strides = array<i32>} : memref<64x128xf32, #tpu.memory_space<vmem>>, vector<64x128xf32>,
    return
  }
  func.func @transform_0(%arg0: i32) -> (i32, i32) {
    %c0_i32 = arith.constant 0 : i32
    %c0_i32_0 = arith.constant 0 : i32
    return %arg0, %c0_i32 : i32, i32
  }
  func.func @transform_1(%arg0: i32) -> (i32, i32) {
    %c0_i32 = arith.constant 0 : i32
    %c0_i32_0 = arith.constant 0 : i32
    %c0_i32_1 = arith.constant 0 : i32
    return %c0_i32, %c0_i32_0 : i32, i32
  }
  func.func @transform_2(%arg0: i32) -> (i32, i32) {
    %c0_i32 = arith.constant 0 : i32
    %c0_i32_0 = arith.constant 0 : i32
    return %arg0, %c0_i32 : i32, i32
  }
  func.func @transform_3(%arg0: i32) -> (i32, i32) {
    %c0_i32 = arith.constant 0 : i32
    %c0_i32_0 = arith.constant 0 : i32
    return %arg0, %c0_i32 : i32, i32
  }
  func.func @transform_4(%arg0: i32) -> (i32, i32) {
    %c0_i32 = arith.constant 0 : i32
    %c0_i32_0 = arith.constant 0 : i32
    return %arg0, %c0_i32 : i32, i32
  }
}

module attributes {stable_mosaic.version = 11 : i64} {
  func.func @kernel(%arg0: i32, %arg1: memref<64x128xbf16, #tpu.memory_space<vmem>>, %arg2: memref<128x256xbf16, #tpu.memory_space<vmem>>, %arg3: memref<64x256xf32, #tpu.memory_space<vmem>>, %arg4: memref<64x128xf32, #tpu.memory_space<vmem>>, %arg5: memref<64x128xf32, #tpu.memory_space<vmem>>) attributes {dimension_semantics = [#tpu.dimension_semantics<parallel>], iteration_bounds = array<i64: 1>, scalar_prefetch = 0 : i64, scratch_operands = 0 : i64, tpu.core_type = #tpu.core_type<tc>, window_params = [{transform_indices = @transform_0, window_bounds = array<i64: 64, 128>}, {pipeline_mode = #tpu.pipeline_mode<synchronous>, transform_indices = @transform_1, window_bounds = array<i64: 128, 256>}, {transform_indices = @transform_2, window_bounds = array<i64: 64, 256>}, {transform_indices = @transform_3, window_bounds = array<i64: 64, 128>}, {transform_indices = @transform_4, window_bounds = array<i64: 64, 128>}]} {
    %c0 = arith.constant 0 : index
    %c0_0 = arith.constant 0 : index
    %0 = vector.load %arg1[%c0, %c0_0] : memref<64x128xbf16, #tpu.memory_space<vmem>>, vector<64x128xbf16>
    %c0_1 = arith.constant 0 : index
    %c0_2 = arith.constant 0 : index
    %1 = vector.load %arg2[%c0_1, %c0_2] : memref<128x256xbf16, #tpu.memory_space<vmem>>, vector<128x256xbf16>
    %cst = arith.constant dense<0.000000e+00> : vector<64x256xf32>
    %2 = tpu.matmul %0, %1, %cst {dimension_numbers = #tpu.dot_dimension_numbers<[1], [0], [0], [1], [0, 0, 1, 1], [], []>} : vector<64x128xbf16>, vector<128x256xbf16>, vector<64x256xf32> -> vector<64x256xf32>
    %c0_3 = arith.constant 0 : index
    %c0_4 = arith.constant 0 : index
    %3 = vector.load %arg3[%c0_3, %c0_4] : memref<64x256xf32, #tpu.memory_space<vmem>>, vector<64x256xf32>
    tpu.vector_store %arg3[%c0_3, %c0_4], %2 {strides = array<i32>} : memref<64x256xf32, #tpu.memory_space<vmem>>, vector<64x256xf32>,
    %c0_5 = arith.constant 0 : index
    %c0_6 = arith.constant 0 : index
    %4 = vector.load %arg3[%c0_5, %c0_6] : memref<64x256xf32, #tpu.memory_space<vmem>>, vector<64x128xf32>
    %c0_7 = arith.constant 0 : index
    %c128 = arith.constant 128 : index
    %5 = vector.load %arg3[%c0_7, %c128] : memref<64x256xf32, #tpu.memory_space<vmem>>, vector<64x128xf32>
    %6 = arith.mulf %4, %4 : vector<64x128xf32>
    %7 = arith.mulf %5, %5 : vector<64x128xf32>
    %8 = arith.addf %6, %7 : vector<64x128xf32>
    %9 = math.sqrt %8 : vector<64x128xf32>
    %c0_8 = arith.constant 0 : index
    %c0_9 = arith.constant 0 : index
    %10 = vector.load %arg4[%c0_8, %c0_9] : memref<64x128xf32, #tpu.memory_space<vmem>>, vector<64x128xf32>
    tpu.vector_store %arg4[%c0_8, %c0_9], %9 {strides = array<i32>} : memref<64x128xf32, #tpu.memory_space<vmem>>, vector<64x128xf32>,
    %11 = math.absf %4 : vector<64x128xf32>
    %12 = math.absf %5 : vector<64x128xf32>
    %cst_10 = arith.constant 2.41421366 : f32
    %13 = vector.broadcast %cst_10 : f32 to vector<64x128xf32>
    %14 = arith.mulf %13, %11 : vector<64x128xf32>
    %15 = arith.cmpf ogt, %12, %14 : vector<64x128xf32>
    %cst_11 = arith.constant dense<true> : vector<64x128xi1>
    %16 = arith.xori %15, %cst_11 : vector<64x128xi1>
    %cst_12 = arith.constant 0.414213568 : f32
    %17 = vector.broadcast %cst_12 : f32 to vector<64x128xf32>
    %18 = arith.mulf %17, %11 : vector<64x128xf32>
    %19 = arith.cmpf ogt, %12, %18 : vector<64x128xf32>
    %20 = arith.andi %16, %19 : vector<64x128xi1>
    %cst_13 = arith.constant 0.000000e+00 : f32
    %21 = vector.broadcast %cst_13 : f32 to vector<64x128xf32>
    %22 = arith.subf %21, %11 : vector<64x128xf32>
    %23 = arith.subf %12, %11 : vector<64x128xf32>
    %24 = arith.select %20, %23, %12 : vector<64x128xi1>, vector<64x128xf32>
    %25 = arith.select %15, %22, %24 : vector<64x128xi1>, vector<64x128xf32>
    %26 = arith.addf %12, %11 : vector<64x128xf32>
    %27 = arith.select %20, %26, %11 : vector<64x128xi1>, vector<64x128xf32>
    %28 = arith.select %15, %12, %27 : vector<64x128xi1>, vector<64x128xf32>
    %cst_14 = arith.constant 0.785398185 : f32
    %cst_15 = arith.constant 0.000000e+00 : f32
    %29 = vector.broadcast %cst_14 : f32 to vector<64x128xf32>
    %30 = vector.broadcast %cst_15 : f32 to vector<64x128xf32>
    %31 = arith.select %20, %29, %30 : vector<64x128xi1>, vector<64x128xf32>
    %cst_16 = arith.constant 1.57079637 : f32
    %32 = vector.broadcast %cst_16 : f32 to vector<64x128xf32>
    %33 = arith.select %15, %32, %31 : vector<64x128xi1>, vector<64x128xf32>
    %cst_17 = arith.constant 0.000000e+00 : f32
    %34 = vector.broadcast %cst_17 : f32 to vector<64x128xf32>
    %35 = arith.cmpf ogt, %28, %34 : vector<64x128xf32>
    %cst_18 = arith.constant 1.000000e+00 : f32
    %36 = vector.broadcast %cst_18 : f32 to vector<64x128xf32>
    %37 = arith.select %35, %28, %36 : vector<64x128xi1>, vector<64x128xf32>
    %38 = tpu.reciprocal %37 {approx = true} : vector<64x128xf32> -> vector<64x128xf32>
    %39 = arith.mulf %25, %38 : vector<64x128xf32>
    %40 = arith.mulf %39, %39 : vector<64x128xf32>
    %cst_19 = arith.constant 0.0805374458 : f32
    %41 = vector.broadcast %cst_19 : f32 to vector<64x128xf32>
    %42 = arith.mulf %41, %40 : vector<64x128xf32>
    %cst_20 = arith.constant 0.138776854 : f32
    %43 = vector.broadcast %cst_20 : f32 to vector<64x128xf32>
    %44 = arith.subf %42, %43 : vector<64x128xf32>
    %45 = arith.mulf %44, %40 : vector<64x128xf32>
    %cst_21 = arith.constant 0.199777111 : f32
    %46 = vector.broadcast %cst_21 : f32 to vector<64x128xf32>
    %47 = arith.addf %45, %46 : vector<64x128xf32>
    %48 = arith.mulf %47, %40 : vector<64x128xf32>
    %cst_22 = arith.constant 0.333329499 : f32
    %49 = vector.broadcast %cst_22 : f32 to vector<64x128xf32>
    %50 = arith.subf %48, %49 : vector<64x128xf32>
    %51 = arith.mulf %50, %40 : vector<64x128xf32>
    %52 = arith.mulf %51, %39 : vector<64x128xf32>
    %53 = arith.addf %52, %39 : vector<64x128xf32>
    %54 = arith.addf %33, %53 : vector<64x128xf32>
    %cst_23 = arith.constant 0.000000e+00 : f32
    %55 = vector.broadcast %cst_23 : f32 to vector<64x128xf32>
    %56 = arith.cmpf olt, %4, %55 : vector<64x128xf32>
    %cst_24 = arith.constant 3.14159274 : f32
    %57 = vector.broadcast %cst_24 : f32 to vector<64x128xf32>
    %58 = arith.subf %57, %54 : vector<64x128xf32>
    %59 = arith.select %56, %58, %54 : vector<64x128xi1>, vector<64x128xf32>
    %cst_25 = arith.constant 0.000000e+00 : f32
    %60 = vector.broadcast %cst_25 : f32 to vector<64x128xf32>
    %61 = arith.cmpf oeq, %11, %60 : vector<64x128xf32>
    %cst_26 = arith.constant 1.57079637 : f32
    %62 = vector.broadcast %cst_26 : f32 to vector<64x128xf32>
    %63 = arith.select %61, %62, %59 : vector<64x128xi1>, vector<64x128xf32>
    %cst_27 = arith.constant 0.000000e+00 : f32
    %64 = vector.broadcast %cst_27 : f32 to vector<64x128xf32>
    %65 = arith.cmpf olt, %5, %64 : vector<64x128xf32>
    %cst_28 = arith.constant 0.000000e+00 : f32
    %66 = vector.broadcast %cst_28 : f32 to vector<64x128xf32>
    %67 = arith.subf %66, %63 : vector<64x128xf32>
    %68 = arith.select %65, %67, %63 : vector<64x128xi1>, vector<64x128xf32>
    %cst_29 = arith.constant 0.000000e+00 : f32
    %69 = vector.broadcast %cst_29 : f32 to vector<64x128xf32>
    %70 = arith.cmpf oeq, %12, %69 : vector<64x128xf32>
    %cst_30 = arith.constant 0.000000e+00 : f32
    %71 = vector.broadcast %cst_30 : f32 to vector<64x128xf32>
    %72 = arith.cmpf olt, %4, %71 : vector<64x128xf32>
    %cst_31 = arith.constant 3.14159274 : f32
    %cst_32 = arith.constant 0.000000e+00 : f32
    %73 = vector.broadcast %cst_31 : f32 to vector<64x128xf32>
    %74 = vector.broadcast %cst_32 : f32 to vector<64x128xf32>
    %75 = arith.select %72, %73, %74 : vector<64x128xi1>, vector<64x128xf32>
    %76 = arith.select %70, %75, %68 : vector<64x128xi1>, vector<64x128xf32>
    %c0_33 = arith.constant 0 : index
    %c0_34 = arith.constant 0 : index
    %77 = vector.load %arg5[%c0_33, %c0_34] : memref<64x128xf32, #tpu.memory_space<vmem>>, vector<64x128xf32>
    tpu.vector_store %arg5[%c0_33, %c0_34], %76 {strides = array<i32>} : memref<64x128xf32, #tpu.memory_space<vmem>>, vector<64x128xf32>,
    return
  }
  func.func @transform_0(%arg0: i32) -> (i32, i32) {
    %c0_i32 = arith.constant 0 : i32
    %c0_i32_0 = arith.constant 0 : i32
    return %arg0, %c0_i32 : i32, i32
  }
  func.func @transform_1(%arg0: i32) -> (i32, i32) {
    %c0_i32 = arith.constant 0 : i32
    %c0_i32_0 = arith.constant 0 : i32
    %c0_i32_1 = arith.constant 0 : i32
    return %c0_i32, %c0_i32_0 : i32, i32
  }
  func.func @transform_2(%arg0: i32) -> (i32, i32) {
    %c0_i32 = arith.constant 0 : i32
    %c0_i32_0 = arith.constant 0 : i32
    return %arg0, %c0_i32 : i32, i32
  }
  func.func @transform_3(%arg0: i32) -> (i32, i32) {
    %c0_i32 = arith.constant 0 : i32
    %c0_i32_0 = arith.constant 0 : i32
    return %arg0, %c0_i32 : i32, i32
  }
  func.func @transform_4(%arg0: i32) -> (i32, i32) {
    %c0_i32 = arith.constant 0 : i32
    %c0_i32_0 = arith.constant 0 : i32
    return %arg0, %c0_i32 : i32, i32
  }
}

</mosaic_0001>

<bundles_post_ra>
// kernel: tpu_custom_call.1
= control target key start
LH: loop header
LB: loop body
LE: loop exit
PB: predicated region body
PF: predicated region fallthrough
CT: control target
= control target key end

     0   :  { %10 = vsyncpa [#allocation3], 0  ;;  %s1986_s0 = inlined_call_operand.hbm [shape: bf16[64,128], index: 0, kind: input, shape index: {}]   ;;  %s1987_s1 = inlined_call_operand.hbm [shape: bf16[128,256], index: 1, kind: input, shape index: {}]   ;;  %s1988_s2 = inlined_call_operand.hbm [shape: f32[64,256], index: 2, kind: output, shape index: {0}]   ;;  %s1989_s3 = inlined_call_operand.hbm [shape: f32[64,128], index: 3, kind: output, shape index: {1}]   ;;  %s1990_s4 = inlined_call_operand.hbm [shape: f32[64,128], index: 4, kind: output, shape index: {2}]  }
   0x1   :  { %11 = vsyncpa [#allocation6], 0 }
   0x2   :  { %12 = vsyncpa [#allocation4], 0 }
   0x3   :  { %13 = vsyncpa [#allocation9], 0  ;;  %s1011_s15 = smov [#allocation2]   ;;  %s893_s19 = scalar_lea.hbm %s1986_s0, 512 }
   0x4   :  { %s19_s16 = sshll.u32 %s1011_s15, 4  ;;  %p894_p0 = scmp.ne.s32.totalorder %s1986_s0, %s893_s19  ;;  %s20_s16 = int_to_ptr.vmem [resolvable:$true] %s19_s16 }
   0x5   :  { %p897_p1 = scmp.lt.u32.totalorder %s893_s19, %s1986_s0 }
   0x7   :  { %p899_p2 = pnand %p897_p1, %p894_p0 }
   0x9   :  { %902 = shalt.err (!%p899_p2)
}
   0xa   :  { %s903_s24 = scalar_lea.vmem %s20_s16, 512  ;;  %p908_p4 = scmp.lt.s32.totalorder %s20_s16, %s20_s16 }
   0xb   :  { %p904_p3 = scmp.ne.s32.totalorder %s20_s16, %s903_s24  ;;  %p909_p5 = scmp.lt.s32.totalorder %s903_s24, %s903_s24 }
   0xd   :  { %p910_p6 = por %p909_p5, %p908_p4 }
   0xf   :  { %p911_p7 = pnand %p910_p6, %p904_p3 }
  0x11   :  { %914 = shalt.err (!%p911_p7)
}
  0x12   :  { %s1012_s25 = smov 64   ;;  %s1013_s26 = smov 4  }
  0x13   :  { %25 = dma.hbm_to_vmem [thread:$0]  %s1986_s0, 512, %s20_s16, [#allocation3], %s1012_s25, %s1012_s25, %s1013_s26  }
  0x14   :  { %s1014_s29 = smov [#allocation5]   ;;  %s915_s7 = scalar_lea.hbm %s1987_s1, 2048 }
  0x15   :  { %s31_s30 = sshll.u32 %s1014_s29, 4  ;;  %p916_p8 = scmp.ne.s32.totalorder %s1987_s1, %s915_s7  ;;  %s32_s30 = int_to_ptr.vmem [resolvable:$true] %s31_s30 }
  0x16   :  { %p919_p9 = scmp.lt.u32.totalorder %s915_s7, %s1987_s1 }
  0x18   :  { %p921_p10 = pnand %p919_p9, %p916_p8 }
  0x1a   :  { %924 = shalt.err (!%p921_p10)
}
  0x1b   :  { %s925_s12 = scalar_lea.vmem %s32_s30, 2048  ;;  %p930_p12 = scmp.lt.s32.totalorder %s32_s30, %s32_s30 }
  0x1c   :  { %p926_p11 = scmp.ne.s32.totalorder %s32_s30, %s925_s12  ;;  %p931_p13 = scmp.lt.s32.totalorder %s925_s12, %s925_s12 }
  0x1e   :  { %p932_p0 = por %p931_p13, %p930_p12 }
  0x20   :  { %p933_p1 = pnand %p932_p0, %p926_p11 }
  0x22   :  { %936 = shalt.err (!%p933_p1)
}
  0x23   :  { %s1015_s0 = smov 128   ;;  %s1016_s13 = smov 8  }
  0x24   :  { %37 = dma.hbm_to_vmem [thread:$0]  %s1987_s1, 2048, %s32_s30, [#allocation6], %s1015_s0, %s1015_s0, %s1016_s13  }
  0x25   :  { %1003 = dma.done.wait [#allocation3], 512  }
  0x26   :  { %1004 = vsyncadd [#allocation3], 4294966784 }
  0x27   :  { %1005 = dma.done.wait [#allocation6], 2048  }
  0x28   :  { %1006 = vsyncadd [#allocation6], 4294965248  ;;  %v1017_v0 = vmov 0   ;;  %v833_v1 = vld [vmem:[#allocation5 + $0x4] ss:$8 sps:$4 sm:$0xff]   ;;  %v858_v18 = vld [vmem:[#allocation2 + $0x10] sm:$0xff]  }
  0x29   :  { %205 = vmatprep.mubr.bf16.mxu0 %v1017_v0  ;;  %225 = vmatprep.mubr.bf16.mxu1 %v1017_v0  ;;  %v835_v2 = vld [vmem:[#allocation5] ss:$8 sps:$4 sm:$0xff]   ;;  %v836_v3 = vld [vmem:[#allocation5 + $0x14] ss:$8 sps:$4 sm:$0xff]   ;;  %v838_v4 = vld [vmem:[#allocation5 + $0x10] ss:$8 sps:$4 sm:$0xff]  }
  0x2a   :  { %173 = vmatprep.subr.bf16.mxu0 %v833_v1  ;;  %803 = vmatprep.subr.bf16.mxu1 %v833_v1  ;;  %v839_v5 = vld [vmem:[#allocation5 + $0x24] ss:$8 sps:$4 sm:$0xff]   ;;  %v841_v6 = vld [vmem:[#allocation5 + $0x20] ss:$8 sps:$4 sm:$0xff]   ;;  %v842_v7 = vld [vmem:[#allocation5 + $0x34] ss:$8 sps:$4 sm:$0xff]  }
  0x2b   :  { %174 = vmatpush1.bf16.msra.mxu0 %v835_v2  ;;  %811 = vmatpush1.bf16.msra.mxu1 %v835_v2  ;;  %v844_v8 = vld [vmem:[#allocation5 + $0x30] ss:$8 sps:$4 sm:$0xff]   ;;  %v845_v9 = vld [vmem:[#allocation5 + $0x44] ss:$8 sps:$4 sm:$0xff]   ;;  %v847_v10 = vld [vmem:[#allocation5 + $0x40] ss:$8 sps:$4 sm:$0xff]  }
  0x2c   :  { %175 = vmatprep.subr.bf16.mxu0 %v836_v3  ;;  %804 = vmatprep.subr.bf16.mxu1 %v836_v3  ;;  %v848_v11 = vld [vmem:[#allocation5 + $0x54] ss:$8 sps:$4 sm:$0xff]   ;;  %v850_v12 = vld [vmem:[#allocation5 + $0x50] ss:$8 sps:$4 sm:$0xff]   ;;  %v851_v13 = vld [vmem:[#allocation5 + $0x64] ss:$8 sps:$4 sm:$0xff]  }
  0x2d   :  { %v853_v14 = vld [vmem:[#allocation5 + $0x60] ss:$8 sps:$4 sm:$0xff]   ;;  %v854_v15 = vld [vmem:[#allocation5 + $0x74] ss:$8 sps:$4 sm:$0xff]   ;;  %v856_v16 = vld [vmem:[#allocation5 + $0x70] ss:$8 sps:$4 sm:$0xff]  }
  0x2e   :  { %v857_v17 = vld [vmem:[#allocation2] sm:$0xff]   ;;  %v859_v19 = vld [vmem:[#allocation2 + $0x8] sm:$0xff]   ;;  %v860_v20 = vld [vmem:[#allocation2 + $0x18] sm:$0xff]   ;;  %s1018_s1 = smov [#allocation7]  }
  0x2f   :  { %176 = vmatpush1.bf16.msra.mxu0 %v838_v4  ;;  %812 = vmatpush1.bf16.msra.mxu1 %v838_v4  ;;  %s723_s16 = sshll.u32 %s1018_s1, 4  ;;  %s1178_s16 = int_to_ptr.vmem [resolvable:$true] %s723_s16 }
  0x30   :  { %177 = vmatprep.subr.bf16.mxu0 %v839_v5  ;;  %805 = vmatprep.subr.bf16.mxu1 %v839_v5  ;;  %s937_s17 = scalar_lea.vmem %s1178_s16, 2048  ;;  %p942_p3 = scmp.lt.s32.totalorder %s1178_s16, %s1178_s16 }
  0x31   :  { %p938_p2 = scmp.ne.s32.totalorder %s1178_s16, %s937_s17  ;;  %p943_p4 = scmp.lt.s32.totalorder %s937_s17, %s937_s17 }
  0x33   :  { %178 = vmatpush1.bf16.msra.mxu0 %v841_v6  ;;  %813 = vmatpush1.bf16.msra.mxu1 %v841_v6  ;;  %p944_p5 = por %p943_p4, %p942_p3 }
  0x34   :  { %179 = vmatprep.subr.bf16.mxu0 %v842_v7  ;;  %806 = vmatprep.subr.bf16.mxu1 %v842_v7 }
  0x35   :  { %p945_p6 = pnand %p944_p5, %p938_p2 }
  0x37   :  { %180 = vmatpush1.bf16.msra.mxu0 %v844_v8  ;;  %814 = vmatpush1.bf16.msra.mxu1 %v844_v8 }
  0x38   :  { %181 = vmatprep.subr.bf16.mxu0 %v845_v9  ;;  %807 = vmatprep.subr.bf16.mxu1 %v845_v9 }
  0x3b   :  { %182 = vmatpush1.bf16.msra.mxu0 %v847_v10  ;;  %815 = vmatpush1.bf16.msra.mxu1 %v847_v10 }
  0x3c   :  { %183 = vmatprep.subr.bf16.mxu0 %v848_v11  ;;  %808 = vmatprep.subr.bf16.mxu1 %v848_v11 }
  0x3f   :  { %184 = vmatpush1.bf16.msra.mxu0 %v850_v12  ;;  %816 = vmatpush1.bf16.msra.mxu1 %v850_v12 }
  0x40   :  { %185 = vmatprep.subr.bf16.mxu0 %v851_v13  ;;  %809 = vmatprep.subr.bf16.mxu1 %v851_v13 }
  0x43   :  { %186 = vmatpush1.bf16.msra.mxu0 %v853_v14  ;;  %817 = vmatpush1.bf16.msra.mxu1 %v853_v14 }
  0x44   :  { %187 = vmatprep.subr.bf16.mxu0 %v854_v15  ;;  %810 = vmatprep.subr.bf16.mxu1 %v854_v15 }
  0x47   :  { %188 = vmatpush1.bf16.msra.mxu0 %v856_v16  ;;  %818 = vmatpush1.bf16.msra.mxu1 %v856_v16 }
  0x4a   :  { %206 = vmatmul.mubr.bf16.vlgmr.msra.gmra.mrb[0].mxu0 %v857_v17  ;;  %226 = vmatmul.mubr.bf16.vlgmr.msra.gmra.mrb[0].mxu1 %v858_v18 }
  0x4b   :  { %215 = vmatprep.mubr.bf16.mxu0 %v1017_v0  ;;  %235 = vmatprep.mubr.bf16.mxu1 %v1017_v0 }
  0x52   :  { %216 = vmatmul.mubr.bf16.gmra.mrb[4].mxu0 %v859_v19  ;;  %236 = vmatmul.mubr.bf16.gmra.mrb[4].mxu1 %v860_v20 }
 0x11d   :  { %v1077_v21 = vpop.f32.mrb[0].mxu0  ;;  %v1079_v22 = vpop.f32.mrb[0].mxu1 }
 0x11e   :  { %2033 = vst [vmem:[#allocation15_spill] sm:$0xff] %v1079_v22  ;;  %246 = vst [vmem:[#allocation7] sm:$0xff] %v1077_v21  ;;  %v278_v23 = vmul.f32 %v1077_v21, %v1077_v21  ;;  %v282_v24 = vmul.f32 %v1079_v22, %v1079_v22  ;;  %v1087_v25 = vpop.f32.mrb[1].mxu0  ;;  %v1089_v26 = vpop.f32.mrb[1].mxu1  ;;  %v1127_v41 = vand.u32 2147483647, %v1077_v21 }
 0x11f   :  { %254 = vst [vmem:[#allocation7 + $0x40] sm:$0xff] %v1079_v22  ;;  %2034 = vst [vmem:[#allocation16_spill] sm:$0xff] %v1089_v26  ;;  %v286_v27 = vmul.f32 %v1087_v25, %v1087_v25  ;;  %v290_v28 = vmul.f32 %v1089_v26, %v1089_v26  ;;  %v1097_v29 = vpop.f32.mrb[2].mxu0  ;;  %v1099_v30 = vpop.f32.mrb[2].mxu1  ;;  %v1135_v44 = vand.u32 2147483647, %v1079_v22 }
 0x120   :  { %247 = vst [vmem:[#allocation7 + $0x8] sm:$0xff] %v1087_v25  ;;  %255 = vst [vmem:[#allocation7 + $0x48] sm:$0xff] %v1089_v26  ;;  %v279_v31 = vmul.f32 %v1097_v29, %v1097_v29  ;;  %v1105_v32 = vpop.f32.mrb[3].mxu0  ;;  %v283_v35 = vmul.f32 %v1099_v30, %v1099_v30  ;;  %v1114_v36 = vpop.f32.mrb[3].mxu1  ;;  %v1138_v45 = vand.u32 2147483647, %v1087_v25 }
 0x121   :  { %2035 = vst [vmem:[#allocation17_spill] sm:$0xff] %v1099_v30  ;;  %248 = vst [vmem:[#allocation7 + $0x10] sm:$0xff] %v1097_v29  ;;  %v1107_v33 = vadd.f32 %v286_v27, %v278_v23  ;;  %v1109_v34 = vadd.f32 %v290_v28, %v282_v24  ;;  %v287_v37 = vmul.f32 %v1105_v32, %v1105_v32  ;;  %v1151_v50 = vand.u32 2147483647, %v1089_v26 }
 0x122   :  { %256 = vst [vmem:[#allocation7 + $0x50] sm:$0xff] %v1099_v30  ;;  %249 = vst [vmem:[#allocation7 + $0x18] sm:$0xff] %v1105_v32  ;;  %v291_v38 = vmul.f32 %v1114_v36, %v1114_v36  ;;  %v1154_v51 = vand.u32 2147483647, %v1097_v29  ;;  %v1167_v56 = vand.u32 2147483647, %v1099_v30 }
 0x123   :  { %2036 = vst [vmem:[#allocation18_spill] sm:$0xff] %v1114_v36  ;;  %257 = vst [vmem:[#allocation7 + $0x58] sm:$0xff] %v1114_v36  ;;  %861 = vrsqrt.f32 %v1107_v33  ;;  %v1122_v39 = vadd.f32 %v287_v37, %v279_v31  ;;  %v1170_v57 = vand.u32 2147483647, %v1105_v32  ;;  %v1181_v60 = vand.u32 2147483647, %v1114_v36 }
 0x124   :  { %v1124_v40 = vadd.f32 %v291_v38, %v283_v35  ;;  %863 = vrsqrt.f32 %v1109_v34  ;;  %2041 = vst [vmem:[#allocation23_spill] sm:$0xff] %v1151_v50  ;;  %vm304_vm0 = vcmp.eq.f32.partialorder %v1107_v33, inf  ;;  %vm306_vm1 = vcmp.eq.f32.partialorder %v1107_v33, 0.0 }
 0x125   :  { %v1129_v42 = vpop.f32.mrb[4].mxu0  ;;  %v1131_v43 = vpop.f32.mrb[4].mxu1  ;;  %2044 = vst [vmem:[#allocation26_spill] sm:$0xff] %v1170_v57  ;;  %2046 = vst [vmem:[#allocation28_spill] sm:$0xff] %v1181_v60  ;;  %v307_v3 = vand.u32 2147483648, %v1107_v33  ;;  %865 = vrsqrt.f32 %v1122_v39  ;;  %vm332_vm2 = vcmp.eq.f32.partialorder %v1109_v34, inf }
 0x126   :  { %2037 = vst [vmem:[#allocation19_spill] sm:$0xff] %v1129_v42  ;;  %2038 = vst [vmem:[#allocation20_spill] sm:$0xff] %v1131_v43  ;;  %v280_v46 = vmul.f32 %v1129_v42, %v1129_v42  ;;  %v284_v47 = vmul.f32 %v1131_v43, %v1131_v43  ;;  %v1146_v48 = vpop.f32.mrb[5].mxu0  ;;  %v1148_v49 = vpop.f32.mrb[5].mxu1  ;;  %vm334_vm3 = vcmp.eq.f32.partialorder %v1109_v34, 0.0 }
 0x127   :  { %250 = vst [vmem:[#allocation7 + $0x20] sm:$0xff] %v1129_v42  ;;  %258 = vst [vmem:[#allocation7 + $0x60] sm:$0xff] %v1131_v43  ;;  %v288_v52 = vmul.f32 %v1146_v48, %v1146_v48  ;;  %v292_v53 = vmul.f32 %v1148_v49, %v1148_v49  ;;  %v1162_v54 = vpop.f32.mrb[6].mxu0  ;;  %v1164_v55 = vpop.f32.mrb[6].mxu1 }
 0x128   :  { %2039 = vst [vmem:[#allocation21_spill] sm:$0xff] %v1146_v48  ;;  %2040 = vst [vmem:[#allocation22_spill] sm:$0xff] %v1148_v49  ;;  %v281_v58 = vmul.f32 %v1162_v54, %v1162_v54  ;;  %v1176_v59 = vpop.f32.mrb[7].mxu0  ;;  %v285_v63 = vmul.f32 %v1164_v55, %v1164_v55  ;;  %v1190_v0 = vpop.f32.mrb[7].mxu1 }
 0x129   :  { %251 = vst [vmem:[#allocation7 + $0x28] sm:$0xff] %v1146_v48  ;;  %259 = vst [vmem:[#allocation7 + $0x68] sm:$0xff] %v1148_v49  ;;  %v1183_v61 = vadd.f32 %v288_v52, %v280_v46  ;;  %v1185_v62 = vadd.f32 %v292_v53, %v284_v47  ;;  %v289_v1 = vmul.f32 %v1176_v59, %v1176_v59 }
 0x12a   :  { %2042 = vst [vmem:[#allocation24_spill] sm:$0xff] %v1162_v54  ;;  %2043 = vst [vmem:[#allocation25_spill] sm:$0xff] %v1164_v55  ;;  %v293_v2 = vmul.f32 %v1190_v0, %v1190_v0 }
 0x12b   :  { %252 = vst [vmem:[#allocation7 + $0x30] sm:$0xff] %v1162_v54  ;;  %260 = vst [vmem:[#allocation7 + $0x70] sm:$0xff] %v1164_v55 }
 0x12c   :  { %2045 = vst [vmem:[#allocation27_spill] sm:$0xff] %v1176_v59  ;;  %253 = vst [vmem:[#allocation7 + $0x38] sm:$0xff] %v1176_v59 }
 0x12d   :  { %2047 = vst [vmem:[#allocation29_spill] sm:$0xff] %v1190_v0  ;;  %261 = vst [vmem:[#allocation7 + $0x78] sm:$0xff] %v1190_v0 }
 0x12e   :  { %948 = shalt.err (!%p945_p6)
}
 0x12f   :  { %s949_s20 = scalar_lea.hbm %s1988_s2, 2048 }
 0x130   :  { %p950_p7 = scmp.ne.s32.totalorder %s1988_s2, %s949_s20  ;;  %p953_p8 = scmp.lt.u32.totalorder %s949_s20, %s1988_s2 }
 0x132   :  { %p955_p9 = pnand %p953_p8, %p950_p7 }
 0x134   :  { %958 = shalt.err (!%p955_p9)
}
 0x135   :  { %s1019_s25 = smov 256   ;;  %s1020_s26 = smov 16   ;;  %v1221_v4 = vand.u32 2147483647, %v1129_v42  ;;  %v1223_v5 = vadd.f32 %v289_v1, %v281_v58  ;;  %v1225_v6 = vadd.f32 %v293_v2, %v285_v63  ;;  %v335_v7 = vand.u32 2147483648, %v1109_v34  ;;  %v862_v8 = vpop.eup %861 }
 0x136   :  { %729 = dma.vmem_to_hbm [thread:$0]  %s1178_s16, 2048, %s1988_s2, [#allocation4], %s1019_s25, %s1019_s25, %s1020_s26   ;;  %v1229_v9 = vand.u32 2147483647, %v1131_v43  ;;  %v1232_v10 = vand.u32 2147483647, %v1146_v48  ;;  %867 = vrsqrt.f32 %v1183_v61  ;;  %v303_v14 = vmul.f32 %v862_v8, %v1107_v33  ;;  %v864_v15 = vpop.eup %863 }
 0x137   :  { %v1235_v11 = vand.u32 2147483647, %v1148_v49  ;;  %v1239_v12 = vand.u32 2147483647, %v1162_v54  ;;  %v1242_v13 = vand.u32 2147483647, %v1164_v55  ;;  %869 = vrsqrt.f32 %v1223_v5  ;;  %v866_v58 = vpop.eup %865 }
 0x138   :  { %2048 = vst [vmem:[#allocation30_spill] sm:$0xff] %v1232_v10  ;;  %v1247_v16 = vand.u32 2147483647, %v1176_v59  ;;  %v1250_v17 = vand.u32 2147483647, %v1190_v0  ;;  %vm311_vm4 = vcmp.eq.f32.partialorder %v1122_v39, inf  ;;  %871 = vrsqrt.f32 %v1124_v40 }
 0x139   :  { %2049 = vst [vmem:[#allocation31_spill] sm:$0xff] %v1235_v11  ;;  %v305_v18 = vsel %vm304_vm0, %v1107_v33, %v303_v14  ;;  %vm313_vm5 = vcmp.eq.f32.partialorder %v1122_v39, 0.0  ;;  %v314_v19 = vand.u32 2147483648, %v1122_v39  ;;  %v331_v20 = vmul.f32 %v864_v15, %v1109_v34  ;;  %s1022_s2 = smov [#allocation8]  }
 0x13a   :  { %2050 = vst [vmem:[#allocation32_spill] sm:$0xff] %v1247_v16  ;;  %2051 = vst [vmem:[#allocation33_spill] sm:$0xff] %v1250_v17  ;;  %873 = vrsqrt.f32 %v1185_v62  ;;  %v308_v23 = vsel %vm306_vm1, %v307_v3, %v305_v18  ;;  %vm318_vm6 = vcmp.eq.f32.partialorder %v1183_v61, inf  ;;  %v321_v24 = vand.u32 2147483648, %v1183_v61  ;;  %s735_s29 = sshll.u32 %s1022_s2, 4  ;;  %s1453_s29 = int_to_ptr.vmem [resolvable:$true] %s735_s29 }
 0x13b   :  { %vm320_vm7 = vcmp.eq.f32.partialorder %v1183_v61, 0.0  ;;  %vm325_vm8 = vcmp.eq.f32.partialorder %v1223_v5, inf  ;;  %v333_v28 = vsel %vm332_vm2, %v1109_v34, %v331_v20  ;;  %875 = vrsqrt.f32 %v1225_v6  ;;  %358 = vst [vmem:[#allocation8] sm:$0xff] %v308_v23  ;;  %s959_s30 = scalar_lea.vmem %s1453_s29, 1024  ;;  %p964_p11 = scmp.lt.s32.totalorder %s1453_s29, %s1453_s29 }
 0x13c   :  { %v336_v33 = vsel %vm334_vm3, %v335_v7, %v333_v28  ;;  %v1280_v38 = vmul.f32 2.4142137, %v1127_v41  ;;  %v1283_v46 = vmul.f32 2.4142137, %v1154_v51  ;;  %v1288_v47 = vmul.f32 2.4142137, %v1221_v4  ;;  %p960_p10 = scmp.ne.s32.totalorder %s1453_s29, %s959_s30  ;;  %p965_p12 = scmp.lt.s32.totalorder %s959_s30, %s959_s30 }
 0x13d   :  { %362 = vst [vmem:[#allocation8 + $0x20] sm:$0xff] %v336_v33  ;;  %v1291_v34 = vmul.f32 2.4142137, %v1239_v12  ;;  %v1294_v52 = vmul.f32 2.4142137, %v1135_v44  ;;  %v310_v3 = vmul.f32 %v866_v58, %v1122_v39  ;;  %vm1021_vm3 = vmmov 1  }
 0x13e   :  { %v1300_v63 = vmul.f32 2.4142137, %v1167_v56  ;;  %v1303_v1 = vmul.f32 2.4142137, %v1229_v9  ;;  %v1306_v2 = vmul.f32 2.4142137, %v1242_v13  ;;  %vm1991_vm14 = vcmp.gt.f32.partialorder %v1138_v45, %v1280_v38  ;;  %p966_p13 = por %p965_p12, %p964_p11 }
 0x13f   :  { %vm2003_vm0 = vcmp.gt.f32.partialorder %v1170_v57, %v1283_v46  ;;  %vm2002_vm1 = vcmp.gt.f32.partialorder %v1232_v10, %v1288_v47  ;;  %vm2001_vm2 = vcmp.gt.f32.partialorder %v1247_v16, %v1291_v34  ;;  %vm1322_vm13 = vmxor %vm1991_vm14, %vm1021_vm3  ;;  %vm1999_vm12 = vcmp.gt.f32.partialorder %v1151_v50, %v1294_v52 }
 0x140   :  { %v868_v8 = vpop.eup %867  ;;  %vm1998_vm11 = vcmp.gt.f32.partialorder %v1181_v60, %v1300_v63  ;;  %vm2000_vm10 = vcmp.gt.f32.partialorder %v1235_v11, %v1303_v1  ;;  %vm2004_vm9 = vcmp.gt.f32.partialorder %v1250_v17, %v1306_v2  ;;  %vm1339_vm14 = vmxor %vm2003_vm0, %vm1021_vm3  ;;  %v312_v18 = vsel %vm311_vm4, %v1122_v39, %v310_v3  ;;  %p967_p0 = pnand %p966_p13, %p960_p10 }
 0x141   :  { %v870_v15 = vpop.eup %869  ;;  %v317_v20 = vmul.f32 %v868_v8, %v1183_v61  ;;  %vm1351_vm15 = vmxor %vm2002_vm1, %vm1021_vm3  ;;  %v406_v28 = vmul.f32 0.41421357, %v1127_v41  ;;  %v407_v33 = vmul.f32 0.41421357, %v1154_v51  ;;  %v315_v53 = vsel %vm313_vm5, %v314_v19, %v312_v18 }
 0x142   :  { %v872_v58 = vpop.eup %871  ;;  %v324_v3 = vmul.f32 %v870_v15, %v1223_v5  ;;  %vm1364_vm4 = vmxor %vm2001_vm2, %vm1021_vm3  ;;  %v408_v37 = vmul.f32 0.41421357, %v1221_v4  ;;  %v409_v35 = vmul.f32 0.41421357, %v1239_v12  ;;  %359 = vst [vmem:[#allocation8 + $0x8] sm:$0xff] %v315_v53  ;;  %v432_v14 = vsub.f32 0.0, %v1221_v4 }
 0x143   :  { %v319_v39 = vsel %vm318_vm6, %v1183_v61, %v317_v20  ;;  %v338_v19 = vmul.f32 %v872_v58, %v1124_v40  ;;  %vm1378_vm5 = vmxor %vm1999_vm12, %vm1021_vm3  ;;  %v410_v18 = vmul.f32 0.41421357, %v1135_v44  ;;  %v1384_v27 = vmul.f32 0.41421357, %v1167_v56 }
 0x144   :  { %v874_v31 = vpop.eup %873  ;;  %v322_v0 = vsel %vm320_vm7, %v321_v24, %v319_v39  ;;  %v326_v53 = vsel %vm325_vm8, %v1223_v5, %v324_v3  ;;  %vm1396_vm6 = vmxor %vm1998_vm11, %vm1021_vm3  ;;  %v1401_v49 = vmul.f32 0.41421357, %v1229_v9  ;;  %v2064_v61 = vand.u32 2147483648, %v1223_v5 }
 0x145   :  { %v345_v20 = vmul.f32 %v874_v31, %v1185_v62  ;;  %v876_v36 = vpop.eup %875  ;;  %vm2065_vm7 = vcmp.eq.f32.partialorder %v1223_v5, 0.0  ;;  %vm2066_vm8 = vcmp.eq.f32.partialorder %v1124_v40, inf  ;;  %360 = vst [vmem:[#allocation8 + $0x10] sm:$0xff] %v322_v0  ;;  %vm1414_vm11 = vmxor %vm2000_vm10, %vm1021_vm3  ;;  %v413_v39 = vmul.f32 0.41421357, %v1242_v13 }
 0x146   :  { %v329_v24 = vsel %vm2065_vm7, %v2064_v61, %v326_v53  ;;  %v340_v31 = vsel %vm2066_vm8, %v1124_v40, %v338_v19  ;;  %vm414_vm12 = vcmp.gt.f32.partialorder %v1138_v45, %v406_v28  ;;  %v2069_v5 = vand.u32 2147483648, %v1124_v40  ;;  %vm1432_vm10 = vmxor %vm2004_vm9, %vm1021_vm3 }
 0x147   :  { %vm2070_vm7 = vcmp.eq.f32.partialorder %v1124_v40, 0.0  ;;  %vm2071_vm8 = vcmp.eq.f32.partialorder %v1185_v62, inf  ;;  %v352_v53 = vmul.f32 %v876_v36, %v1225_v6  ;;  %361 = vst [vmem:[#allocation8 + $0x18] sm:$0xff] %v329_v24  ;;  %vm415_vm2 = vcmp.gt.f32.partialorder %v1170_v57, %v407_v33  ;;  %vm1446_vm3 = vmand %vm1322_vm13, %vm414_vm12 }
 0x148   :  { %v343_v19 = vsel %vm2070_vm7, %v2069_v5, %v340_v31  ;;  %v347_v0 = vsel %vm2071_vm8, %v1185_v62, %v345_v20  ;;  %v2074_v40 = vand.u32 2147483648, %v1185_v62  ;;  %vm2075_vm7 = vcmp.eq.f32.partialorder %v1185_v62, 0.0  ;;  %vm1462_vm13 = vmand %vm1339_vm14, %vm415_vm2 }
 0x149   :  { %363 = vst [vmem:[#allocation8 + $0x28] sm:$0xff] %v343_v19  ;;  %vm416_vm8 = vcmp.gt.f32.partialorder %v1232_v10, %v408_v37  ;;  %vm417_vm1 = vcmp.gt.f32.partialorder %v1247_v16, %v409_v35  ;;  %vm2078_vm9 = vcmp.eq.f32.partialorder %v1225_v6, inf  ;;  %vm420_vm0 = vcmp.gt.f32.partialorder %v1235_v11, %v1401_v49 }
 0x14a   :  { %v350_v28 = vsel %vm2075_vm7, %v2074_v40, %v347_v0  ;;  %v354_v33 = vsel %vm2078_vm9, %v1225_v6, %v352_v53  ;;  %vm421_vm12 = vcmp.gt.f32.partialorder %v1250_v17, %v413_v39  ;;  %v2081_v37 = vand.u32 2147483648, %v1225_v6  ;;  %vm1472_vm7 = vmand %vm1351_vm15, %vm416_vm8 }
 0x14b   :  { %364 = vst [vmem:[#allocation8 + $0x30] sm:$0xff] %v350_v28  ;;  %vm2082_vm9 = vcmp.eq.f32.partialorder %v1225_v6, 0.0  ;;  %v430_v24 = vsub.f32 0.0, %v1127_v41  ;;  %v431_v31 = vsub.f32 0.0, %v1154_v51  ;;  %vm1483_vm14 = vmand %vm1364_vm4, %vm417_vm1  ;;  %v433_v23 = vsub.f32 0.0, %v1239_v12 }
 0x14c   :  { %v357_v7 = vsel %vm2082_vm9, %v2081_v37, %v354_v33  ;;  %v434_v5 = vsub.f32 0.0, %v1135_v44  ;;  %v435_v19 = vsub.f32 0.0, %v1167_v56  ;;  %v436_v0 = vsub.f32 0.0, %v1229_v9 }
 0x14d   :  { %365 = vst [vmem:[#allocation8 + $0x38] sm:$0xff] %v357_v7 }
 0x14e   :  { %970 = shalt.err (!%p967_p0)
}
 0x14f   :  { %s971_s7 = scalar_lea.hbm %s1989_s3, 1024 }
 0x150   :  { %p972_p1 = scmp.ne.s32.totalorder %s1989_s3, %s971_s7  ;;  %p975_p2 = scmp.lt.u32.totalorder %s971_s7, %s1989_s3 }
 0x152   :  { %p977_p3 = pnand %p975_p2, %p972_p1 }
 0x154   :  { %980 = shalt.err (!%p977_p3)
}
 0x155   :  { %741 = dma.vmem_to_hbm [thread:$0]  %s1453_s29, 1024, %s1989_s3, [#allocation9], %s1015_s0, %s1015_s0, %s1016_s13   ;;  %vm2087_vm15 = vcmp.gt.f32.partialorder %v1151_v50, %v410_v18  ;;  %v437_v8 = vsub.f32 0.0, %v1242_v13  ;;  %v439_v53 = vsub.f32 %v1170_v57, %v1154_v51  ;;  %v440_v40 = vsub.f32 %v1232_v10, %v1221_v4 }
 0x156   :  { %vm1515_vm1 = vmand %vm1378_vm5, %vm2087_vm15  ;;  %v441_v28 = vsub.f32 %v1247_v16, %v1239_v12  ;;  %vm2090_vm2 = vcmp.gt.f32.partialorder %v1181_v60, %v1384_v27  ;;  %v442_v18 = vsub.f32 %v1151_v50, %v1135_v44  ;;  %v443_v33 = vsub.f32 %v1181_v60, %v1167_v56  ;;  %s1024_s3 = smov [#allocation10]  }
 0x157   :  { %vm1531_vm4 = vmand %vm1396_vm6, %vm2090_vm2  ;;  %v444_v37 = vsub.f32 %v1235_v11, %v1229_v9  ;;  %v445_v7 = vsub.f32 %v1250_v17, %v1242_v13  ;;  %v2095_v58 = vsub.f32 %v1138_v45, %v1127_v41  ;;  %v447_v59 = vsel %vm1462_vm13, %v439_v53, %v1170_v57  ;;  %s747_s15 = sshll.u32 %s1024_s3, 4  ;;  %s748_s15 = int_to_ptr.vmem [resolvable:$true] %s747_s15 }
 0x158   :  { %vm1548_vm5 = vmand %vm1414_vm11, %vm420_vm0  ;;  %v448_v49 = vsel %vm1472_vm7, %v440_v40, %v1232_v10  ;;  %v449_v3 = vsel %vm1483_vm14, %v441_v28, %v1247_v16  ;;  %v450_v53 = vsel %vm1515_vm1, %v442_v18, %v1151_v50  ;;  %v451_v40 = vsel %vm1531_vm4, %v443_v33, %v1181_v60  ;;  %s981_s1 = scalar_lea.vmem %s748_s15, 1024  ;;  %p986_p5 = scmp.lt.s32.totalorder %s748_s15, %s748_s15 }
 0x159   :  { %v446_v26 = vsel %vm1446_vm3, %v2095_v58, %v1138_v45  ;;  %vm1571_vm11 = vmand %vm1432_vm10, %vm421_vm12  ;;  %v452_v28 = vsel %vm1548_vm5, %v444_v37, %v1235_v11  ;;  %vm2098_vm0 = vcmp.gt.f32.partialorder %v1138_v45, %v1280_v38  ;;  %vm2099_vm10 = vcmp.gt.f32.partialorder %v1170_v57, %v1283_v46  ;;  %p982_p4 = scmp.ne.s32.totalorder %s748_s15, %s981_s1  ;;  %p987_p6 = scmp.lt.s32.totalorder %s981_s1, %s981_s1 }
 0x15a   :  { %v1587_v39 = vsel %vm2098_vm0, %v430_v24, %v446_v26  ;;  %v453_v61 = vsel %vm1571_vm11, %v445_v7, %v1250_v17  ;;  %v1595_v18 = vsel %vm2099_vm10, %v431_v31, %v447_v59  ;;  %vm2100_vm6 = vcmp.gt.f32.partialorder %v1232_v10, %v1288_v47 }
 0x15b   :  { %v1600_v33 = vsel %vm2100_vm6, %v432_v14, %v448_v49  ;;  %vm2101_vm8 = vcmp.gt.f32.partialorder %v1247_v16, %v1291_v34  ;;  %vm2102_vm12 = vcmp.gt.f32.partialorder %v1151_v50, %v1294_v52  ;;  %vm2103_vm9 = vcmp.gt.f32.partialorder %v1181_v60, %v1300_v63  ;;  %p988_p7 = por %p987_p6, %p986_p5 }
 0x15c   :  { %v1605_v37 = vsel %vm2101_vm8, %v433_v23, %v449_v3  ;;  %v1610_v26 = vsel %vm2102_vm12, %v434_v5, %v450_v53  ;;  %v1615_v59 = vsel %vm2103_vm9, %v435_v19, %v451_v40  ;;  %vm2104_vm15 = vcmp.gt.f32.partialorder %v1235_v11, %v1303_v1 }
 0x15d   :  { %v1620_v24 = vsel %vm2104_vm15, %v436_v0, %v452_v28  ;;  %vm2105_vm2 = vcmp.gt.f32.partialorder %v1250_v17, %v1306_v2  ;;  %v462_v14 = vadd.f32 %v1138_v45, %v1127_v41  ;;  %v463_v23 = vadd.f32 %v1170_v57, %v1154_v51  ;;  %p989_p8 = pnand %p988_p7, %p982_p4 }
 0x15e   :  { %v1625_v31 = vsel %vm2105_vm2, %v437_v8, %v453_v61  ;;  %v464_v5 = vadd.f32 %v1232_v10, %v1221_v4  ;;  %v465_v19 = vadd.f32 %v1247_v16, %v1239_v12  ;;  %v466_v0 = vadd.f32 %v1151_v50, %v1135_v44 }
 0x15f   :  { %v467_v7 = vadd.f32 %v1181_v60, %v1167_v56  ;;  %v468_v8 = vadd.f32 %v1235_v11, %v1229_v9  ;;  %v469_v58 = vadd.f32 %v1250_v17, %v1242_v13  ;;  %v470_v49 = vsel %vm1446_vm3, %v462_v14, %v1127_v41 }
 0x160   :  { %v471_v3 = vsel %vm1462_vm13, %v463_v23, %v1154_v51  ;;  %v472_v53 = vsel %vm1472_vm7, %v464_v5, %v1221_v4  ;;  %v473_v40 = vsel %vm1483_vm14, %v465_v19, %v1239_v12  ;;  %v474_v28 = vsel %vm1515_vm1, %v466_v0, %v1135_v44 }
 0x161   :  { %v475_v61 = vsel %vm1531_vm4, %v467_v7, %v1167_v56  ;;  %v476_v14 = vsel %vm1548_vm5, %v468_v8, %v1229_v9  ;;  %v477_v23 = vsel %vm1571_vm11, %v469_v58, %v1242_v13  ;;  %v478_v5 = vsel %vm2098_vm0, %v1138_v45, %v470_v49 }
 0x162   :  { %v479_v19 = vsel %vm2099_vm10, %v1170_v57, %v471_v3  ;;  %v480_v0 = vsel %vm2100_vm6, %v1232_v10, %v472_v53  ;;  %v481_v7 = vsel %vm2101_vm8, %v1247_v16, %v473_v40  ;;  %v482_v8 = vsel %vm2102_vm12, %v1151_v50, %v474_v28 }
 0x163   :  { %v483_v58 = vsel %vm2103_vm9, %v1181_v60, %v475_v61  ;;  %v484_v49 = vsel %vm2104_vm15, %v1235_v11, %v476_v14  ;;  %v485_v3 = vsel %vm2105_vm2, %v1250_v17, %v477_v23  ;;  %v1023_v53 = vmov 0.0  }
 0x164   :  { %v486_v40 = vsel %vm1446_vm3, 0.7853982, %v1023_v53  ;;  %v487_v28 = vsel %vm1462_vm13, 0.7853982, %v1023_v53  ;;  %v488_v61 = vsel %vm1472_vm7, 0.7853982, %v1023_v53  ;;  %vm2106_vm3 = vmmov %vm2098_vm0 }
 0x165   :  { %v489_v14 = vsel %vm1483_vm14, 0.7853982, %v1023_v53  ;;  %v490_v23 = vsel %vm1515_vm1, 0.7853982, %v1023_v53  ;;  %v491_v36 = vsel %vm1531_vm4, 0.7853982, %v1023_v53  ;;  %vm2107_vm7 = vmmov %vm2099_vm10 }
 0x166   :  { %v492_v62 = vsel %vm1548_vm5, 0.7853982, %v1023_v53  ;;  %v493_v20 = vsel %vm1571_vm11, 0.7853982, %v1023_v53  ;;  %v1726_v6 = vsel %vm2106_vm3, 1.5707964, %v486_v40  ;;  %vm2108_vm13 = vmmov %vm2100_vm6 }
 0x167   :  { %v1731_v35 = vsel %vm2107_vm7, 1.5707964, %v487_v28  ;;  %v1736_v15 = vsel %vm2108_vm13, 1.5707964, %v488_v61  ;;  %vm2109_vm14 = vmmov %vm2101_vm8  ;;  %vm502_vm0 = vcmp.gt.f32.partialorder %v478_v5, 0.0  ;;  %vm503_vm10 = vcmp.gt.f32.partialorder %v479_v19, 0.0 }
 0x168   :  { %v1741_v48 = vsel %vm2109_vm14, 1.5707964, %v489_v14  ;;  %vm2110_vm1 = vmmov %vm2102_vm12  ;;  %vm504_vm6 = vcmp.gt.f32.partialorder %v480_v0, 0.0  ;;  %vm505_vm8 = vcmp.gt.f32.partialorder %v481_v7, 0.0  ;;  %vm506_vm12 = vcmp.gt.f32.partialorder %v482_v8, 0.0 }
 0x169   :  { %v1746_v38 = vsel %vm2110_vm1, 1.5707964, %v490_v23  ;;  %vm2111_vm4 = vmmov %vm2103_vm9  ;;  %v510_v52 = vsel %vm502_vm0, %v478_v5, 1.0  ;;  %v511_v27 = vsel %vm503_vm10, %v479_v19, 1.0  ;;  %vm507_vm9 = vcmp.gt.f32.partialorder %v483_v58, 0.0 }
 0x16a   :  { %v1751_v46 = vsel %vm2111_vm4, 1.5707964, %v491_v36  ;;  %vm2112_vm5 = vmmov %vm2104_vm15  ;;  %v512_v63 = vsel %vm504_vm6, %v480_v0, 1.0  ;;  %vm508_vm15 = vcmp.gt.f32.partialorder %v484_v49, 0.0  ;;  %v513_v40 = vsel %vm505_vm8, %v481_v7, 1.0 }
 0x16b   :  { %v1756_v47 = vsel %vm2112_vm5, 1.5707964, %v492_v62  ;;  %vm2113_vm11 = vmmov %vm2105_vm2  ;;  %877 = vrcp.f32 %v510_v52  ;;  %vm509_vm2 = vcmp.gt.f32.partialorder %v485_v3, 0.0  ;;  %v514_v1 = vsel %vm506_vm12, %v482_v8, 1.0 }
 0x16c   :  { %v1761_v34 = vsel %vm2113_vm11, 1.5707964, %v493_v20  ;;  %879 = vrcp.f32 %v511_v27  ;;  %v515_v28 = vsel %vm507_vm9, %v483_v58, 1.0  ;;  %v516_v2 = vsel %vm508_vm15, %v484_v49, 1.0 }
 0x16d   :  { %2114 = vst [vmem:[#allocation34_spill] sm:$0xff] %v1761_v34  ;;  %881 = vrcp.f32 %v512_v63  ;;  %v517_v61 = vsel %vm509_vm2, %v485_v3, 1.0  ;;  %vm622_vm3 = vcmp.lt.f32.partialorder %v1077_v21, 0.0  ;;  %vm623_vm7 = vcmp.lt.f32.partialorder %v1097_v29, 0.0 }
 0x16e   :  { %883 = vrcp.f32 %v513_v40  ;;  %vm624_vm13 = vcmp.lt.f32.partialorder %v1129_v42, 0.0  ;;  %vm625_vm14 = vcmp.lt.f32.partialorder %v1162_v54, 0.0  ;;  %vm626_vm1 = vcmp.lt.f32.partialorder %v1079_v22, 0.0 }
 0x16f   :  { %885 = vrcp.f32 %v514_v1  ;;  %vm627_vm4 = vcmp.lt.f32.partialorder %v1099_v30, 0.0  ;;  %vm2032_vm5 = vcmp.lt.f32.partialorder %v1131_v43, 0.0  ;;  %vm2031_vm11 = vcmp.lt.f32.partialorder %v1164_v55, 0.0 }
 0x170   :  { %887 = vrcp.f32 %v515_v28  ;;  %v1780_v58 = vsel %vm622_vm3, 3.1415927, %v1023_v53  ;;  %v1795_v14 = vsel %vm624_vm13, 3.1415927, %v1023_v53  ;;  %v1800_v23 = vsel %vm625_vm14, 3.1415927, %v1023_v53 }
 0x171   :  { %889 = vrcp.f32 %v516_v2  ;;  %2115 = vst [vmem:[#allocation35_spill] sm:$0xff] %v1780_v58  ;;  %2117 = vst [vmem:[#allocation37_spill] sm:$0xff] %v1795_v14  ;;  %v1810_v20 = vsel %vm626_vm1, 3.1415927, %v1023_v53  ;;  %v1815_v52 = vsel %vm627_vm4, 3.1415927, %v1023_v53 }
 0x172   :  { %891 = vrcp.f32 %v517_v61  ;;  %2118 = vst [vmem:[#allocation38_spill] sm:$0xff] %v1800_v23  ;;  %2119 = vst [vmem:[#allocation39_spill] sm:$0xff] %v1810_v20  ;;  %v1825_v1 = vsel %vm2032_vm5, 3.1415927, %v1023_v53  ;;  %vm646_vm0 = vcmp.eq.f32.partialorder %v1127_v41, 0.0  ;;  %vm647_vm10 = vcmp.eq.f32.partialorder %v1154_v51, 0.0 }
 0x173   :  { %2120 = vst [vmem:[#allocation40_spill] sm:$0xff] %v1815_v52  ;;  %2121 = vst [vmem:[#allocation41_spill] sm:$0xff] %v1825_v1  ;;  %vm648_vm6 = vcmp.eq.f32.partialorder %v1221_v4, 0.0  ;;  %vm649_vm8 = vcmp.eq.f32.partialorder %v1239_v12, 0.0  ;;  %vm663_vm9 = vcmp.lt.f32.partialorder %v1105_v32, 0.0  ;;  %vm686_vm12 = vcmp.eq.f32.partialorder %v1138_v45, 0.0 }
 0x174   :  { %v2133_v29 = vld [vmem:[#allocation34_spill] sm:$0xff]  ;;  %v2137_v41 = vld [vmem:[#allocation31_spill] sm:$0xff] }
 0x175   :  { %v878_v5 = vpop.eup %877 }
 0x176   :  { %v880_v19 = vpop.eup %879  ;;  %v1768_v0 = vmul.f32 %v878_v5, %v1587_v39  ;;  %v1785_v39 = vsel %vm623_vm7, 3.1415927, %v1023_v53 }
 0x177   :  { %v882_v7 = vpop.eup %881  ;;  %v1774_v8 = vmul.f32 %v880_v19, %v1595_v18  ;;  %2116 = vst [vmem:[#allocation36_spill] sm:$0xff] %v1785_v39 }
 0x178   :  { %v884_v49 = vpop.eup %883  ;;  %v1788_v3 = vmul.f32 %v882_v7, %v1600_v33  ;;  %v534_v18 = vmul.f32 %v1768_v0, %v1768_v0 }
 0x179   :  { %v886_v36 = vpop.eup %885  ;;  %v1803_v62 = vmul.f32 %v884_v49, %v1605_v37  ;;  %v535_v33 = vmul.f32 %v1774_v8, %v1774_v8 }
 0x17a   :  { %v888_v27 = vpop.eup %887  ;;  %v1818_v63 = vmul.f32 %v886_v36, %v1610_v26  ;;  %v536_v37 = vmul.f32 %v1788_v3, %v1788_v3  ;;  %v542_v40 = vmul.f32 0.080537446, %v534_v18  ;;  %v1835_v26 = vsel %vm2031_vm11, 3.1415927, %v1023_v53 }
 0x17b   :  { %v890_v28 = vpop.eup %889  ;;  %v1828_v2 = vmul.f32 %v888_v27, %v1615_v59  ;;  %v537_v61 = vmul.f32 %v1803_v62, %v1803_v62  ;;  %v543_v5 = vmul.f32 0.080537446, %v535_v33  ;;  %2122 = vst [vmem:[#allocation42_spill] sm:$0xff] %v1835_v26 }
 0x17c   :  { %v892_v19 = vpop.eup %891  ;;  %v1838_v7 = vmul.f32 %v890_v28, %v1620_v24  ;;  %v538_v49 = vmul.f32 %v1818_v63, %v1818_v63  ;;  %v544_v36 = vmul.f32 0.080537446, %v536_v37  ;;  %v787_v1 = vadd.f32 -0.13877685, %v542_v40 }
 0x17d   :  { %v1843_v59 = vmul.f32 %v892_v19, %v1625_v31  ;;  %v539_v27 = vmul.f32 %v1828_v2, %v1828_v2  ;;  %v545_v52 = vmul.f32 0.080537446, %v537_v61  ;;  %v788_v20 = vadd.f32 -0.13877685, %v543_v5 }
 0x17e   :  { %v540_v53 = vmul.f32 %v1838_v7, %v1838_v7  ;;  %v546_v26 = vmul.f32 0.080537446, %v538_v49  ;;  %v789_v23 = vadd.f32 -0.13877685, %v544_v36  ;;  %v558_v24 = vmul.f32 %v787_v1, %v534_v18 }
 0x17f   :  { %v541_v28 = vmul.f32 %v1843_v59, %v1843_v59  ;;  %v547_v14 = vmul.f32 0.080537446, %v539_v27  ;;  %v790_v39 = vadd.f32 -0.13877685, %v545_v52  ;;  %v559_v40 = vmul.f32 %v788_v20, %v535_v33 }
 0x180   :  { %v548_v58 = vmul.f32 0.080537446, %v540_v53  ;;  %v791_v31 = vadd.f32 -0.13877685, %v546_v26  ;;  %v560_v19 = vmul.f32 %v789_v23, %v536_v37  ;;  %v566_v55 = vadd.f32 0.19977711, %v558_v24 }
 0x181   :  { %v549_v43 = vmul.f32 0.080537446, %v541_v28  ;;  %v792_v30 = vadd.f32 -0.13877685, %v547_v14  ;;  %v561_v22 = vmul.f32 %v790_v39, %v537_v61  ;;  %v567_v5 = vadd.f32 0.19977711, %v559_v40 }
 0x182   :  { %v793_v17 = vadd.f32 -0.13877685, %v548_v58  ;;  %v562_v11 = vmul.f32 %v791_v31, %v538_v49  ;;  %v568_v60 = vadd.f32 0.19977711, %v560_v19  ;;  %v574_v50 = vmul.f32 %v566_v55, %v534_v18 }
 0x183   :  { %v794_v36 = vadd.f32 -0.13877685, %v549_v43  ;;  %v563_v1 = vmul.f32 %v792_v30, %v539_v27  ;;  %v569_v54 = vadd.f32 0.19977711, %v561_v22  ;;  %v575_v34 = vmul.f32 %v567_v5, %v535_v33 }
 0x184   :  { %v564_v16 = vmul.f32 %v793_v17, %v540_v53  ;;  %v570_v10 = vadd.f32 0.19977711, %v562_v11  ;;  %v576_v52 = vmul.f32 %v568_v60, %v536_v37  ;;  %v795_v20 = vadd.f32 -0.3333295, %v574_v50 }
 0x185   :  { %v565_v57 = vmul.f32 %v794_v36, %v541_v28  ;;  %v571_v26 = vadd.f32 0.19977711, %v563_v1  ;;  %v577_v23 = vmul.f32 %v569_v54, %v537_v61  ;;  %v796_v24 = vadd.f32 -0.3333295, %v575_v34 }
 0x186   :  { %v572_v42 = vadd.f32 0.19977711, %v564_v16  ;;  %v578_v14 = vmul.f32 %v570_v10, %v538_v49  ;;  %v797_v39 = vadd.f32 -0.3333295, %v576_v52  ;;  %v590_v40 = vmul.f32 %v795_v20, %v534_v18 }
 0x187   :  { %v573_v58 = vadd.f32 0.19977711, %v565_v57  ;;  %v579_v31 = vmul.f32 %v571_v26, %v539_v27  ;;  %v798_v19 = vadd.f32 -0.3333295, %v577_v23  ;;  %v591_v55 = vmul.f32 %v796_v24, %v535_v33  ;;  %v2123_v26 = vld [vmem:[#allocation21_spill] sm:$0xff] }
 0x188   :  { %v580_v43 = vmul.f32 %v572_v42, %v540_v53  ;;  %v799_v30 = vadd.f32 -0.3333295, %v578_v14  ;;  %v592_v22 = vmul.f32 %v797_v39, %v536_v37  ;;  %v598_v17 = vmul.f32 %v590_v40, %v1768_v0  ;;  %v2127_v39 = vld [vmem:[#allocation22_spill] sm:$0xff] }
 0x189   :  { %v581_v11 = vmul.f32 %v573_v58, %v541_v28  ;;  %v800_v60 = vadd.f32 -0.3333295, %v579_v31  ;;  %v593_v50 = vmul.f32 %v798_v19, %v537_v61  ;;  %v599_v5 = vmul.f32 %v591_v55, %v1774_v8 }
 0x18a   :  { %v801_v54 = vadd.f32 -0.3333295, %v580_v43  ;;  %v594_v10 = vmul.f32 %v799_v30, %v538_v49  ;;  %v600_v16 = vmul.f32 %v592_v22, %v1788_v3  ;;  %v606_v57 = vadd.f32 %v598_v17, %v1768_v0  ;;  %v2132_v22 = vld [vmem:[#allocation32_spill] sm:$0xff] }
 0x18b   :  { %v802_v42 = vadd.f32 -0.3333295, %v581_v11  ;;  %v595_v34 = vmul.f32 %v800_v60, %v539_v27  ;;  %v601_v18 = vmul.f32 %v593_v50, %v1803_v62  ;;  %v607_v33 = vadd.f32 %v599_v5, %v1774_v8  ;;  %v2135_v5 = vld [vmem:[#allocation23_spill] sm:$0xff] }
 0x18c   :  { %v596_v37 = vmul.f32 %v801_v54, %v540_v53  ;;  %v602_v61 = vmul.f32 %v594_v10, %v1818_v63  ;;  %v608_v49 = vadd.f32 %v600_v16, %v1788_v3  ;;  %v614_v36 = vadd.f32 %v606_v57, %v1726_v6  ;;  %v2136_v54 = vld [vmem:[#allocation28_spill] sm:$0xff]  ;;  %v2138_v10 = vld [vmem:[#allocation33_spill] sm:$0xff] }
 0x18d   :  { %v597_v0 = vmul.f32 %v802_v42, %v541_v28  ;;  %v603_v27 = vmul.f32 %v595_v34, %v1828_v2  ;;  %v609_v1 = vadd.f32 %v601_v18, %v1803_v62  ;;  %v615_v8 = vadd.f32 %v607_v33, %v1731_v35 }
 0x18e   :  { %v604_v52 = vmul.f32 %v596_v37, %v1838_v7  ;;  %v610_v53 = vadd.f32 %v602_v61, %v1818_v63  ;;  %v616_v20 = vadd.f32 %v608_v49, %v1736_v15  ;;  %v630_v3 = vsub.f32 3.1415927, %v614_v36  ;;  %v2124_v63 = vld [vmem:[#allocation27_spill] sm:$0xff] }
 0x18f   :  { %v605_v6 = vmul.f32 %v597_v0, %v1843_v59  ;;  %v611_v28 = vadd.f32 %v603_v27, %v1828_v2  ;;  %v617_v62 = vadd.f32 %v609_v1, %v1741_v48  ;;  %v631_v35 = vsub.f32 3.1415927, %v615_v8  ;;  %v2125_v2 = vld [vmem:[#allocation16_spill] sm:$0xff]  ;;  %v2126_v48 = vld [vmem:[#allocation18_spill] sm:$0xff] }
 0x190   :  { %v612_v15 = vadd.f32 %v604_v52, %v1838_v7  ;;  %v618_v23 = vadd.f32 %v610_v53, %v1746_v38  ;;  %v632_v24 = vsub.f32 3.1415927, %v616_v20  ;;  %v638_v14 = vsel %vm622_vm3, %v630_v3, %v614_v36  ;;  %v2128_v38 = vld [vmem:[#allocation29_spill] sm:$0xff]  ;;  %v2142_v36 = vld [vmem:[#allocation20_spill] sm:$0xff] }
 0x191   :  { %vm666_vm2 = vcmp.lt.f32.partialorder %v2125_v2, 0.0  ;;  %v613_v40 = vadd.f32 %v605_v6, %v1843_v59  ;;  %v619_v58 = vadd.f32 %v611_v28, %v1751_v46  ;;  %v633_v31 = vsub.f32 3.1415927, %v617_v62  ;;  %v2130_v59 = vld [vmem:[#allocation26_spill] sm:$0xff] }
 0x192   :  { %v639_v7 = vsel %vm623_vm7, %v631_v35, %v615_v8  ;;  %vm669_vm5 = vcmp.lt.f32.partialorder %v2128_v38, 0.0  ;;  %v620_v21 = vadd.f32 %v612_v15, %v1756_v47  ;;  %v634_v19 = vsub.f32 3.1415927, %v618_v23  ;;  %v2131_v46 = vld [vmem:[#allocation30_spill] sm:$0xff]  ;;  %v2145_v8 = vld [vmem:[#allocation25_spill] sm:$0xff] }
 0x193   :  { %v640_v43 = vsel %vm624_vm13, %v632_v24, %v616_v20  ;;  %v654_v30 = vsel %vm646_vm0, 1.5707964, %v638_v14  ;;  %vm688_vm11 = vcmp.eq.f32.partialorder %v2131_v46, 0.0  ;;  %vm689_vm15 = vcmp.eq.f32.partialorder %v2132_v22, 0.0  ;;  %v2155_v24 = vld [vmem:[#allocation36_spill] sm:$0xff]  ;;  %v2157_v14 = vld [vmem:[#allocation37_spill] sm:$0xff] }
 0x194   :  { %v621_v17 = vadd.f32 %v613_v40, %v2133_v29  ;;  %v635_v11 = vsub.f32 3.1415927, %v619_v58  ;;  %v641_v50 = vsel %vm625_vm14, %v633_v31, %v617_v62  ;;  %v655_v47 = vsel %vm647_vm10, 1.5707964, %v639_v7  ;;  %v2159_v40 = vld [vmem:[#allocation39_spill] sm:$0xff]  ;;  %v2161_v7 = vld [vmem:[#allocation41_spill] sm:$0xff] }
 0x195   :  { %vm690_vm7 = vcmp.eq.f32.partialorder %v2135_v5, 0.0  ;;  %vm691_vm13 = vcmp.eq.f32.partialorder %v2136_v54, 0.0  ;;  %vm692_vm0 = vcmp.eq.f32.partialorder %v2137_v41, 0.0  ;;  %v636_v16 = vsub.f32 3.1415927, %v620_v21 }
 0x196   :  { %v642_v42 = vsel %vm626_vm1, %v634_v19, %v618_v23  ;;  %v656_v34 = vsel %vm648_vm6, 1.5707964, %v640_v43  ;;  %v657_v18 = vsel %vm649_vm8, 1.5707964, %v641_v50  ;;  %v637_v51 = vsub.f32 3.1415927, %v621_v17 }
 0x197   :  { %v643_v37 = vsel %vm627_vm4, %v635_v11, %v619_v58  ;;  %vm2141_vm14 = vcmp.eq.f32.partialorder %v1135_v44, 0.0  ;;  %v670_v49 = vsub.f32 0.0, %v654_v30  ;;  %vm2143_vm10 = vcmp.lt.f32.partialorder %v2142_v36, 0.0  ;;  %v2154_v23 = vld [vmem:[#allocation35_spill] sm:$0xff]  ;;  %v2160_v58 = vld [vmem:[#allocation40_spill] sm:$0xff] }
 0x198   :  { %v658_v61 = vsel %vm2141_vm14, 1.5707964, %v642_v42  ;;  %v644_v0 = vsel %vm2143_vm10, %v636_v16, %v620_v21  ;;  %vm2144_vm3 = vcmp.eq.f32.partialorder %v1167_v56, 0.0  ;;  %v671_v1 = vsub.f32 0.0, %v655_v47  ;;  %v2162_v21 = vld [vmem:[#allocation42_spill] sm:$0xff] }
 0x199   :  { %v659_v27 = vsel %vm2144_vm3, 1.5707964, %v643_v37  ;;  %v672_v4 = vsub.f32 0.0, %v656_v34  ;;  %vm2146_vm1 = vcmp.lt.f32.partialorder %v2145_v8, 0.0  ;;  %vm2147_vm6 = vcmp.eq.f32.partialorder %v1229_v9, 0.0 }
 0x19a   :  { %v645_v12 = vsel %vm2146_vm1, %v637_v51, %v621_v17  ;;  %v660_v52 = vsel %vm2147_vm6, 1.5707964, %v644_v0  ;;  %v673_v53 = vsub.f32 0.0, %v657_v18  ;;  %v674_v20 = vsub.f32 0.0, %v658_v61 }
 0x19b   :  { %vm2148_vm4 = vcmp.eq.f32.partialorder %v1242_v13, 0.0  ;;  %v675_v3 = vsub.f32 0.0, %v659_v27  ;;  %v676_v6 = vsub.f32 0.0, %v660_v52  ;;  %vm2149_vm8 = vcmp.lt.f32.partialorder %v1087_v25, 0.0 }
 0x19c   :  { %v661_v44 = vsel %vm2148_vm4, 1.5707964, %v645_v12  ;;  %v678_v28 = vsel %vm2149_vm8, %v670_v49, %v654_v30  ;;  %v679_v62 = vsel %vm663_vm9, %v671_v1, %v655_v47  ;;  %vm2150_vm3 = vcmp.lt.f32.partialorder %v2123_v26, 0.0 }
 0x19d   :  { %v677_v56 = vsub.f32 0.0, %v661_v44  ;;  %v680_v9 = vsel %vm2150_vm3, %v672_v4, %v656_v34  ;;  %vm2151_vm14 = vcmp.lt.f32.partialorder %v2124_v63, 0.0  ;;  %v682_v13 = vsel %vm666_vm2, %v674_v20, %v658_v61 }
 0x19e   :  { %v681_v35 = vsel %vm2151_vm14, %v673_v53, %v657_v18  ;;  %vm2152_vm10 = vcmp.lt.f32.partialorder %v2126_v48, 0.0  ;;  %vm2153_vm1 = vcmp.lt.f32.partialorder %v2127_v39, 0.0  ;;  %v702_v32 = vsel %vm686_vm12, %v2154_v23, %v678_v28  ;;  %v2158_v48 = vld [vmem:[#allocation38_spill] sm:$0xff] }
 0x19f   :  { %v683_v15 = vsel %vm2152_vm10, %v675_v3, %v659_v27  ;;  %v684_v25 = vsel %vm2153_vm1, %v676_v6, %v660_v52  ;;  %v685_v26 = vsel %vm669_vm5, %v677_v56, %v661_v44  ;;  %vm2156_vm9 = vcmp.eq.f32.partialorder %v2130_v59, 0.0  ;;  %710 = vst [vmem:[#allocation10] sm:$0xff] %v702_v32 }
 0x1a0   :  { %v703_v63 = vsel %vm2156_vm9, %v2155_v24, %v679_v62  ;;  %v704_v2 = vsel %vm688_vm11, %v2157_v14, %v680_v9  ;;  %v705_v39 = vsel %vm689_vm15, %v2158_v48, %v681_v35  ;;  %v706_v45 = vsel %vm690_vm7, %v2159_v40, %v682_v13 }
 0x1a1   :  { %v707_v31 = vsel %vm691_vm13, %v2160_v58, %v683_v15  ;;  %v708_v38 = vsel %vm692_vm0, %v2161_v7, %v684_v25  ;;  %vm2163_vm5 = vcmp.eq.f32.partialorder %v2138_v10, 0.0  ;;  %711 = vst [vmem:[#allocation10 + $0x8] sm:$0xff] %v703_v63  ;;  %712 = vst [vmem:[#allocation10 + $0x10] sm:$0xff] %v704_v2 }
 0x1a2   :  { %v709_v19 = vsel %vm2163_vm5, %v2162_v21, %v685_v26  ;;  %713 = vst [vmem:[#allocation10 + $0x18] sm:$0xff] %v705_v39  ;;  %714 = vst [vmem:[#allocation10 + $0x20] sm:$0xff] %v706_v45 }
 0x1a3   :  { %715 = vst [vmem:[#allocation10 + $0x28] sm:$0xff] %v707_v31  ;;  %716 = vst [vmem:[#allocation10 + $0x30] sm:$0xff] %v708_v38 }
 0x1a4   :  { %717 = vst [vmem:[#allocation10 + $0x38] sm:$0xff] %v709_v19 }
 0x1a5   :  { %992 = shalt.err (!%p989_p8)
}
 0x1a6   :  { %s993_s18 = scalar_lea.hbm %s1990_s4, 1024 }
 0x1a7   :  { %p994_p9 = scmp.ne.s32.totalorder %s1990_s4, %s993_s18  ;;  %p997_p10 = scmp.lt.u32.totalorder %s993_s18, %s1990_s4 }
 0x1a9   :  { %p999_p11 = pnand %p997_p10, %p994_p9 }
 0x1ab   :  { %1002 = shalt.err (!%p999_p11)
}
 0x1ac   :  { %753 = dma.vmem_to_hbm [thread:$0]  %s748_s15, 1024, %s1990_s4, [#allocation9], %s1015_s0, %s1015_s0, %s1016_s13  }
 0x1ad   :  { %1007 = dma.done.wait [#allocation4], 2048  }
 0x1ae   :  { %1008 = vsyncadd [#allocation4], 4294965248 }
 0x1af   :  { %1009 = dma.done.wait [#allocation9], 2048  }
 0x1b0   :  { %1010 = vsyncadd [#allocation9], 4294965248 }
 0x1b1   :  { %763 = vsyncpa [#allocation3], 1 }
 0x1b2   :  { %764 = vsyncpa [#allocation6], 1 }
 0x1b3   :  { %765 = vsyncpa [#allocation4], 1 }
 0x1b4   :  { %766 = vsyncpa [#allocation9], 1 }

// kernel: tpu_custom_call.1
= control target key start
LH: loop header
LB: loop body
LE: loop exit
PB: predicated region body
PF: predicated region fallthrough
CT: control target
= control target key end

     0   :  { %10 = vsyncpa [#allocation3], 0  ;;  %s1986_s0 = inlined_call_operand.hbm [shape: bf16[64,128], index: 0, kind: input, shape index: {}]   ;;  %s1987_s1 = inlined_call_operand.hbm [shape: bf16[128,256], index: 1, kind: input, shape index: {}]   ;;  %s1988_s2 = inlined_call_operand.hbm [shape: f32[64,256], index: 2, kind: output, shape index: {0}]   ;;  %s1989_s3 = inlined_call_operand.hbm [shape: f32[64,128], index: 3, kind: output, shape index: {1}]   ;;  %s1990_s4 = inlined_call_operand.hbm [shape: f32[64,128], index: 4, kind: output, shape index: {2}]  }
   0x1   :  { %11 = vsyncpa [#allocation6], 0 }
   0x2   :  { %12 = vsyncpa [#allocation4], 0 }
   0x3   :  { %13 = vsyncpa [#allocation9], 0  ;;  %s1011_s15 = smov [#allocation2]   ;;  %s893_s19 = scalar_lea.hbm %s1986_s0, 512 }
   0x4   :  { %s19_s16 = sshll.u32 %s1011_s15, 4  ;;  %p894_p0 = scmp.ne.s32.totalorder %s1986_s0, %s893_s19  ;;  %s20_s16 = int_to_ptr.vmem [resolvable:$true] %s19_s16 }
   0x5   :  { %p897_p1 = scmp.lt.u32.totalorder %s893_s19, %s1986_s0 }
   0x7   :  { %p899_p2 = pnand %p897_p1, %p894_p0 }
   0x9   :  { %902 = shalt.err (!%p899_p2)
}
   0xa   :  { %s903_s24 = scalar_lea.vmem %s20_s16, 512  ;;  %p908_p4 = scmp.lt.s32.totalorder %s20_s16, %s20_s16 }
   0xb   :  { %p904_p3 = scmp.ne.s32.totalorder %s20_s16, %s903_s24  ;;  %p909_p5 = scmp.lt.s32.totalorder %s903_s24, %s903_s24 }
   0xd   :  { %p910_p6 = por %p909_p5, %p908_p4 }
   0xf   :  { %p911_p7 = pnand %p910_p6, %p904_p3 }
  0x11   :  { %914 = shalt.err (!%p911_p7)
}
  0x12   :  { %s1012_s25 = smov 64   ;;  %s1013_s26 = smov 4  }
  0x13   :  { %25 = dma.hbm_to_vmem [thread:$0]  %s1986_s0, 512, %s20_s16, [#allocation3], %s1012_s25, %s1012_s25, %s1013_s26  }
  0x14   :  { %s1014_s29 = smov [#allocation5]   ;;  %s915_s7 = scalar_lea.hbm %s1987_s1, 2048 }
  0x15   :  { %s31_s30 = sshll.u32 %s1014_s29, 4  ;;  %p916_p8 = scmp.ne.s32.totalorder %s1987_s1, %s915_s7  ;;  %s32_s30 = int_to_ptr.vmem [resolvable:$true] %s31_s30 }
  0x16   :  { %p919_p9 = scmp.lt.u32.totalorder %s915_s7, %s1987_s1 }
  0x18   :  { %p921_p10 = pnand %p919_p9, %p916_p8 }
  0x1a   :  { %924 = shalt.err (!%p921_p10)
}
  0x1b   :  { %s925_s12 = scalar_lea.vmem %s32_s30, 2048  ;;  %p930_p12 = scmp.lt.s32.totalorder %s32_s30, %s32_s30 }
  0x1c   :  { %p926_p11 = scmp.ne.s32.totalorder %s32_s30, %s925_s12  ;;  %p931_p13 = scmp.lt.s32.totalorder %s925_s12, %s925_s12 }
  0x1e   :  { %p932_p0 = por %p931_p13, %p930_p12 }
  0x20   :  { %p933_p1 = pnand %p932_p0, %p926_p11 }
  0x22   :  { %936 = shalt.err (!%p933_p1)
}
  0x23   :  { %s1015_s0 = smov 128   ;;  %s1016_s13 = smov 8  }
  0x24   :  { %37 = dma.hbm_to_vmem [thread:$0]  %s1987_s1, 2048, %s32_s30, [#allocation6], %s1015_s0, %s1015_s0, %s1016_s13  }
  0x25   :  { %1003 = dma.done.wait [#allocation3], 512  }
  0x26   :  { %1004 = vsyncadd [#allocation3], 4294966784 }
  0x27   :  { %1005 = dma.done.wait [#allocation6], 2048  }
  0x28   :  { %1006 = vsyncadd [#allocation6], 4294965248  ;;  %v1017_v0 = vmov 0   ;;  %v833_v1 = vld [vmem:[#allocation5 + $0x4] ss:$8 sps:$4 sm:$0xff]   ;;  %v858_v18 = vld [vmem:[#allocation2 + $0x10] sm:$0xff]  }
  0x29   :  { %205 = vmatprep.mubr.bf16.mxu0 %v1017_v0  ;;  %225 = vmatprep.mubr.bf16.mxu1 %v1017_v0  ;;  %v835_v2 = vld [vmem:[#allocation5] ss:$8 sps:$4 sm:$0xff]   ;;  %v836_v3 = vld [vmem:[#allocation5 + $0x14] ss:$8 sps:$4 sm:$0xff]   ;;  %v838_v4 = vld [vmem:[#allocation5 + $0x10] ss:$8 sps:$4 sm:$0xff]  }
  0x2a   :  { %173 = vmatprep.subr.bf16.mxu0 %v833_v1  ;;  %803 = vmatprep.subr.bf16.mxu1 %v833_v1  ;;  %v839_v5 = vld [vmem:[#allocation5 + $0x24] ss:$8 sps:$4 sm:$0xff]   ;;  %v841_v6 = vld [vmem:[#allocation5 + $0x20] ss:$8 sps:$4 sm:$0xff]   ;;  %v842_v7 = vld [vmem:[#allocation5 + $0x34] ss:$8 sps:$4 sm:$0xff]  }
  0x2b   :  { %174 = vmatpush1.bf16.msra.mxu0 %v835_v2  ;;  %811 = vmatpush1.bf16.msra.mxu1 %v835_v2  ;;  %v844_v8 = vld [vmem:[#allocation5 + $0x30] ss:$8 sps:$4 sm:$0xff]   ;;  %v845_v9 = vld [vmem:[#allocation5 + $0x44] ss:$8 sps:$4 sm:$0xff]   ;;  %v847_v10 = vld [vmem:[#allocation5 + $0x40] ss:$8 sps:$4 sm:$0xff]  }
  0x2c   :  { %175 = vmatprep.subr.bf16.mxu0 %v836_v3  ;;  %804 = vmatprep.subr.bf16.mxu1 %v836_v3  ;;  %v848_v11 = vld [vmem:[#allocation5 + $0x54] ss:$8 sps:$4 sm:$0xff]   ;;  %v850_v12 = vld [vmem:[#allocation5 + $0x50] ss:$8 sps:$4 sm:$0xff]   ;;  %v851_v13 = vld [vmem:[#allocation5 + $0x64] ss:$8 sps:$4 sm:$0xff]  }
  0x2d   :  { %v853_v14 = vld [vmem:[#allocation5 + $0x60] ss:$8 sps:$4 sm:$0xff]   ;;  %v854_v15 = vld [vmem:[#allocation5 + $0x74] ss:$8 sps:$4 sm:$0xff]   ;;  %v856_v16 = vld [vmem:[#allocation5 + $0x70] ss:$8 sps:$4 sm:$0xff]  }
  0x2e   :  { %v857_v17 = vld [vmem:[#allocation2] sm:$0xff]   ;;  %v859_v19 = vld [vmem:[#allocation2 + $0x8] sm:$0xff]   ;;  %v860_v20 = vld [vmem:[#allocation2 + $0x18] sm:$0xff]   ;;  %s1018_s1 = smov [#allocation7]  }
  0x2f   :  { %176 = vmatpush1.bf16.msra.mxu0 %v838_v4  ;;  %812 = vmatpush1.bf16.msra.mxu1 %v838_v4  ;;  %s723_s16 = sshll.u32 %s1018_s1, 4  ;;  %s1178_s16 = int_to_ptr.vmem [resolvable:$true] %s723_s16 }
  0x30   :  { %177 = vmatprep.subr.bf16.mxu0 %v839_v5  ;;  %805 = vmatprep.subr.bf16.mxu1 %v839_v5  ;;  %s937_s17 = scalar_lea.vmem %s1178_s16, 2048  ;;  %p942_p3 = scmp.lt.s32.totalorder %s1178_s16, %s1178_s16 }
  0x31   :  { %p938_p2 = scmp.ne.s32.totalorder %s1178_s16, %s937_s17  ;;  %p943_p4 = scmp.lt.s32.totalorder %s937_s17, %s937_s17 }
  0x33   :  { %178 = vmatpush1.bf16.msra.mxu0 %v841_v6  ;;  %813 = vmatpush1.bf16.msra.mxu1 %v841_v6  ;;  %p944_p5 = por %p943_p4, %p942_p3 }
  0x34   :  { %179 = vmatprep.subr.bf16.mxu0 %v842_v7  ;;  %806 = vmatprep.subr.bf16.mxu1 %v842_v7 }
  0x35   :  { %p945_p6 = pnand %p944_p5, %p938_p2 }
  0x37   :  { %180 = vmatpush1.bf16.msra.mxu0 %v844_v8  ;;  %814 = vmatpush1.bf16.msra.mxu1 %v844_v8 }
  0x38   :  { %181 = vmatprep.subr.bf16.mxu0 %v845_v9  ;;  %807 = vmatprep.subr.bf16.mxu1 %v845_v9 }
  0x3b   :  { %182 = vmatpush1.bf16.msra.mxu0 %v847_v10  ;;  %815 = vmatpush1.bf16.msra.mxu1 %v847_v10 }
  0x3c   :  { %183 = vmatprep.subr.bf16.mxu0 %v848_v11  ;;  %808 = vmatprep.subr.bf16.mxu1 %v848_v11 }
  0x3f   :  { %184 = vmatpush1.bf16.msra.mxu0 %v850_v12  ;;  %816 = vmatpush1.bf16.msra.mxu1 %v850_v12 }
  0x40   :  { %185 = vmatprep.subr.bf16.mxu0 %v851_v13  ;;  %809 = vmatprep.subr.bf16.mxu1 %v851_v13 }
  0x43   :  { %186 = vmatpush1.bf16.msra.mxu0 %v853_v14  ;;  %817 = vmatpush1.bf16.msra.mxu1 %v853_v14 }
  0x44   :  { %187 = vmatprep.subr.bf16.mxu0 %v854_v15  ;;  %810 = vmatprep.subr.bf16.mxu1 %v854_v15 }
  0x47   :  { %188 = vmatpush1.bf16.msra.mxu0 %v856_v16  ;;  %818 = vmatpush1.bf16.msra.mxu1 %v856_v16 }
  0x4a   :  { %206 = vmatmul.mubr.bf16.vlgmr.msra.gmra.mrb[0].mxu0 %v857_v17  ;;  %226 = vmatmul.mubr.bf16.vlgmr.msra.gmra.mrb[0].mxu1 %v858_v18 }
  0x4b   :  { %215 = vmatprep.mubr.bf16.mxu0 %v1017_v0  ;;  %235 = vmatprep.mubr.bf16.mxu1 %v1017_v0 }
  0x52   :  { %216 = vmatmul.mubr.bf16.gmra.mrb[4].mxu0 %v859_v19  ;;  %236 = vmatmul.mubr.bf16.gmra.mrb[4].mxu1 %v860_v20 }
 0x11d   :  { %v1077_v21 = vpop.f32.mrb[0].mxu0  ;;  %v1079_v22 = vpop.f32.mrb[0].mxu1 }
 0x11e   :  { %2033 = vst [vmem:[#allocation15_spill] sm:$0xff] %v1079_v22  ;;  %246 = vst [vmem:[#allocation7] sm:$0xff] %v1077_v21  ;;  %v278_v23 = vmul.f32 %v1077_v21, %v1077_v21  ;;  %v282_v24 = vmul.f32 %v1079_v22, %v1079_v22  ;;  %v1087_v25 = vpop.f32.mrb[1].mxu0  ;;  %v1089_v26 = vpop.f32.mrb[1].mxu1  ;;  %v1127_v41 = vand.u32 2147483647, %v1077_v21 }
 0x11f   :  { %254 = vst [vmem:[#allocation7 + $0x40] sm:$0xff] %v1079_v22  ;;  %2034 = vst [vmem:[#allocation16_spill] sm:$0xff] %v1089_v26  ;;  %v286_v27 = vmul.f32 %v1087_v25, %v1087_v25  ;;  %v290_v28 = vmul.f32 %v1089_v26, %v1089_v26  ;;  %v1097_v29 = vpop.f32.mrb[2].mxu0  ;;  %v1099_v30 = vpop.f32.mrb[2].mxu1  ;;  %v1135_v44 = vand.u32 2147483647, %v1079_v22 }
 0x120   :  { %247 = vst [vmem:[#allocation7 + $0x8] sm:$0xff] %v1087_v25  ;;  %255 = vst [vmem:[#allocation7 + $0x48] sm:$0xff] %v1089_v26  ;;  %v279_v31 = vmul.f32 %v1097_v29, %v1097_v29  ;;  %v1105_v32 = vpop.f32.mrb[3].mxu0  ;;  %v283_v35 = vmul.f32 %v1099_v30, %v1099_v30  ;;  %v1114_v36 = vpop.f32.mrb[3].mxu1  ;;  %v1138_v45 = vand.u32 2147483647, %v1087_v25 }
 0x121   :  { %2035 = vst [vmem:[#allocation17_spill] sm:$0xff] %v1099_v30  ;;  %248 = vst [vmem:[#allocation7 + $0x10] sm:$0xff] %v1097_v29  ;;  %v1107_v33 = vadd.f32 %v286_v27, %v278_v23  ;;  %v1109_v34 = vadd.f32 %v290_v28, %v282_v24  ;;  %v287_v37 = vmul.f32 %v1105_v32, %v1105_v32  ;;  %v1151_v50 = vand.u32 2147483647, %v1089_v26 }
 0x122   :  { %256 = vst [vmem:[#allocation7 + $0x50] sm:$0xff] %v1099_v30  ;;  %249 = vst [vmem:[#allocation7 + $0x18] sm:$0xff] %v1105_v32  ;;  %v291_v38 = vmul.f32 %v1114_v36, %v1114_v36  ;;  %v1154_v51 = vand.u32 2147483647, %v1097_v29  ;;  %v1167_v56 = vand.u32 2147483647, %v1099_v30 }
 0x123   :  { %2036 = vst [vmem:[#allocation18_spill] sm:$0xff] %v1114_v36  ;;  %257 = vst [vmem:[#allocation7 + $0x58] sm:$0xff] %v1114_v36  ;;  %861 = vrsqrt.f32 %v1107_v33  ;;  %v1122_v39 = vadd.f32 %v287_v37, %v279_v31  ;;  %v1170_v57 = vand.u32 2147483647, %v1105_v32  ;;  %v1181_v60 = vand.u32 2147483647, %v1114_v36 }
 0x124   :  { %v1124_v40 = vadd.f32 %v291_v38, %v283_v35  ;;  %863 = vrsqrt.f32 %v1109_v34  ;;  %2041 = vst [vmem:[#allocation23_spill] sm:$0xff] %v1151_v50  ;;  %vm304_vm0 = vcmp.eq.f32.partialorder %v1107_v33, inf  ;;  %vm306_vm1 = vcmp.eq.f32.partialorder %v1107_v33, 0.0 }
 0x125   :  { %v1129_v42 = vpop.f32.mrb[4].mxu0  ;;  %v1131_v43 = vpop.f32.mrb[4].mxu1  ;;  %2044 = vst [vmem:[#allocation26_spill] sm:$0xff] %v1170_v57  ;;  %2046 = vst [vmem:[#allocation28_spill] sm:$0xff] %v1181_v60  ;;  %v307_v3 = vand.u32 2147483648, %v1107_v33  ;;  %865 = vrsqrt.f32 %v1122_v39  ;;  %vm332_vm2 = vcmp.eq.f32.partialorder %v1109_v34, inf }
 0x126   :  { %2037 = vst [vmem:[#allocation19_spill] sm:$0xff] %v1129_v42  ;;  %2038 = vst [vmem:[#allocation20_spill] sm:$0xff] %v1131_v43  ;;  %v280_v46 = vmul.f32 %v1129_v42, %v1129_v42  ;;  %v284_v47 = vmul.f32 %v1131_v43, %v1131_v43  ;;  %v1146_v48 = vpop.f32.mrb[5].mxu0  ;;  %v1148_v49 = vpop.f32.mrb[5].mxu1  ;;  %vm334_vm3 = vcmp.eq.f32.partialorder %v1109_v34, 0.0 }
 0x127   :  { %250 = vst [vmem:[#allocation7 + $0x20] sm:$0xff] %v1129_v42  ;;  %258 = vst [vmem:[#allocation7 + $0x60] sm:$0xff] %v1131_v43  ;;  %v288_v52 = vmul.f32 %v1146_v48, %v1146_v48  ;;  %v292_v53 = vmul.f32 %v1148_v49, %v1148_v49  ;;  %v1162_v54 = vpop.f32.mrb[6].mxu0  ;;  %v1164_v55 = vpop.f32.mrb[6].mxu1 }
 0x128   :  { %2039 = vst [vmem:[#allocation21_spill] sm:$0xff] %v1146_v48  ;;  %2040 = vst [vmem:[#allocation22_spill] sm:$0xff] %v1148_v49  ;;  %v281_v58 = vmul.f32 %v1162_v54, %v1162_v54  ;;  %v1176_v59 = vpop.f32.mrb[7].mxu0  ;;  %v285_v63 = vmul.f32 %v1164_v55, %v1164_v55  ;;  %v1190_v0 = vpop.f32.mrb[7].mxu1 }
 0x129   :  { %251 = vst [vmem:[#allocation7 + $0x28] sm:$0xff] %v1146_v48  ;;  %259 = vst [vmem:[#allocation7 + $0x68] sm:$0xff] %v1148_v49  ;;  %v1183_v61 = vadd.f32 %v288_v52, %v280_v46  ;;  %v1185_v62 = vadd.f32 %v292_v53, %v284_v47  ;;  %v289_v1 = vmul.f32 %v1176_v59, %v1176_v59 }
 0x12a   :  { %2042 = vst [vmem:[#allocation24_spill] sm:$0xff] %v1162_v54  ;;  %2043 = vst [vmem:[#allocation25_spill] sm:$0xff] %v1164_v55  ;;  %v293_v2 = vmul.f32 %v1190_v0, %v1190_v0 }
 0x12b   :  { %252 = vst [vmem:[#allocation7 + $0x30] sm:$0xff] %v1162_v54  ;;  %260 = vst [vmem:[#allocation7 + $0x70] sm:$0xff] %v1164_v55 }
 0x12c   :  { %2045 = vst [vmem:[#allocation27_spill] sm:$0xff] %v1176_v59  ;;  %253 = vst [vmem:[#allocation7 + $0x38] sm:$0xff] %v1176_v59 }
 0x12d   :  { %2047 = vst [vmem:[#allocation29_spill] sm:$0xff] %v1190_v0  ;;  %261 = vst [vmem:[#allocation7 + $0x78] sm:$0xff] %v1190_v0 }
 0x12e   :  { %948 = shalt.err (!%p945_p6)
}
 0x12f   :  { %s949_s20 = scalar_lea.hbm %s1988_s2, 2048 }
 0x130   :  { %p950_p7 = scmp.ne.s32.totalorder %s1988_s2, %s949_s20  ;;  %p953_p8 = scmp.lt.u32.totalorder %s949_s20, %s1988_s2 }
 0x132   :  { %p955_p9 = pnand %p953_p8, %p950_p7 }
 0x134   :  { %958 = shalt.err (!%p955_p9)
}
 0x135   :  { %s1019_s25 = smov 256   ;;  %s1020_s26 = smov 16   ;;  %v1221_v4 = vand.u32 2147483647, %v1129_v42  ;;  %v1223_v5 = vadd.f32 %v289_v1, %v281_v58  ;;  %v1225_v6 = vadd.f32 %v293_v2, %v285_v63  ;;  %v335_v7 = vand.u32 2147483648, %v1109_v34  ;;  %v862_v8 = vpop.eup %861 }
 0x136   :  { %729 = dma.vmem_to_hbm [thread:$0]  %s1178_s16, 2048, %s1988_s2, [#allocation4], %s1019_s25, %s1019_s25, %s1020_s26   ;;  %v1229_v9 = vand.u32 2147483647, %v1131_v43  ;;  %v1232_v10 = vand.u32 2147483647, %v1146_v48  ;;  %867 = vrsqrt.f32 %v1183_v61  ;;  %v303_v14 = vmul.f32 %v862_v8, %v1107_v33  ;;  %v864_v15 = vpop.eup %863 }
 0x137   :  { %v1235_v11 = vand.u32 2147483647, %v1148_v49  ;;  %v1239_v12 = vand.u32 2147483647, %v1162_v54  ;;  %v1242_v13 = vand.u32 2147483647, %v1164_v55  ;;  %869 = vrsqrt.f32 %v1223_v5  ;;  %v866_v58 = vpop.eup %865 }
 0x138   :  { %2048 = vst [vmem:[#allocation30_spill] sm:$0xff] %v1232_v10  ;;  %v1247_v16 = vand.u32 2147483647, %v1176_v59  ;;  %v1250_v17 = vand.u32 2147483647, %v1190_v0  ;;  %vm311_vm4 = vcmp.eq.f32.partialorder %v1122_v39, inf  ;;  %871 = vrsqrt.f32 %v1124_v40 }
 0x139   :  { %2049 = vst [vmem:[#allocation31_spill] sm:$0xff] %v1235_v11  ;;  %v305_v18 = vsel %vm304_vm0, %v1107_v33, %v303_v14  ;;  %vm313_vm5 = vcmp.eq.f32.partialorder %v1122_v39, 0.0  ;;  %v314_v19 = vand.u32 2147483648, %v1122_v39  ;;  %v331_v20 = vmul.f32 %v864_v15, %v1109_v34  ;;  %s1022_s2 = smov [#allocation8]  }
 0x13a   :  { %2050 = vst [vmem:[#allocation32_spill] sm:$0xff] %v1247_v16  ;;  %2051 = vst [vmem:[#allocation33_spill] sm:$0xff] %v1250_v17  ;;  %873 = vrsqrt.f32 %v1185_v62  ;;  %v308_v23 = vsel %vm306_vm1, %v307_v3, %v305_v18  ;;  %vm318_vm6 = vcmp.eq.f32.partialorder %v1183_v61, inf  ;;  %v321_v24 = vand.u32 2147483648, %v1183_v61  ;;  %s735_s29 = sshll.u32 %s1022_s2, 4  ;;  %s1453_s29 = int_to_ptr.vmem [resolvable:$true] %s735_s29 }
 0x13b   :  { %vm320_vm7 = vcmp.eq.f32.partialorder %v1183_v61, 0.0  ;;  %vm325_vm8 = vcmp.eq.f32.partialorder %v1223_v5, inf  ;;  %v333_v28 = vsel %vm332_vm2, %v1109_v34, %v331_v20  ;;  %875 = vrsqrt.f32 %v1225_v6  ;;  %358 = vst [vmem:[#allocation8] sm:$0xff] %v308_v23  ;;  %s959_s30 = scalar_lea.vmem %s1453_s29, 1024  ;;  %p964_p11 = scmp.lt.s32.totalorder %s1453_s29, %s1453_s29 }
 0x13c   :  { %v336_v33 = vsel %vm334_vm3, %v335_v7, %v333_v28  ;;  %v1280_v38 = vmul.f32 2.4142137, %v1127_v41  ;;  %v1283_v46 = vmul.f32 2.4142137, %v1154_v51  ;;  %v1288_v47 = vmul.f32 2.4142137, %v1221_v4  ;;  %p960_p10 = scmp.ne.s32.totalorder %s1453_s29, %s959_s30  ;;  %p965_p12 = scmp.lt.s32.totalorder %s959_s30, %s959_s30 }
 0x13d   :  { %362 = vst [vmem:[#allocation8 + $0x20] sm:$0xff] %v336_v33  ;;  %v1291_v34 = vmul.f32 2.4142137, %v1239_v12  ;;  %v1294_v52 = vmul.f32 2.4142137, %v1135_v44  ;;  %v310_v3 = vmul.f32 %v866_v58, %v1122_v39  ;;  %vm1021_vm3 = vmmov 1  }
 0x13e   :  { %v1300_v63 = vmul.f32 2.4142137, %v1167_v56  ;;  %v1303_v1 = vmul.f32 2.4142137, %v1229_v9  ;;  %v1306_v2 = vmul.f32 2.4142137, %v1242_v13  ;;  %vm1991_vm14 = vcmp.gt.f32.partialorder %v1138_v45, %v1280_v38  ;;  %p966_p13 = por %p965_p12, %p964_p11 }
 0x13f   :  { %vm2003_vm0 = vcmp.gt.f32.partialorder %v1170_v57, %v1283_v46  ;;  %vm2002_vm1 = vcmp.gt.f32.partialorder %v1232_v10, %v1288_v47  ;;  %vm2001_vm2 = vcmp.gt.f32.partialorder %v1247_v16, %v1291_v34  ;;  %vm1322_vm13 = vmxor %vm1991_vm14, %vm1021_vm3  ;;  %vm1999_vm12 = vcmp.gt.f32.partialorder %v1151_v50, %v1294_v52 }
 0x140   :  { %v868_v8 = vpop.eup %867  ;;  %vm1998_vm11 = vcmp.gt.f32.partialorder %v1181_v60, %v1300_v63  ;;  %vm2000_vm10 = vcmp.gt.f32.partialorder %v1235_v11, %v1303_v1  ;;  %vm2004_vm9 = vcmp.gt.f32.partialorder %v1250_v17, %v1306_v2  ;;  %vm1339_vm14 = vmxor %vm2003_vm0, %vm1021_vm3  ;;  %v312_v18 = vsel %vm311_vm4, %v1122_v39, %v310_v3  ;;  %p967_p0 = pnand %p966_p13, %p960_p10 }
 0x141   :  { %v870_v15 = vpop.eup %869  ;;  %v317_v20 = vmul.f32 %v868_v8, %v1183_v61  ;;  %vm1351_vm15 = vmxor %vm2002_vm1, %vm1021_vm3  ;;  %v406_v28 = vmul.f32 0.41421357, %v1127_v41  ;;  %v407_v33 = vmul.f32 0.41421357, %v1154_v51  ;;  %v315_v53 = vsel %vm313_vm5, %v314_v19, %v312_v18 }
 0x142   :  { %v872_v58 = vpop.eup %871  ;;  %v324_v3 = vmul.f32 %v870_v15, %v1223_v5  ;;  %vm1364_vm4 = vmxor %vm2001_vm2, %vm1021_vm3  ;;  %v408_v37 = vmul.f32 0.41421357, %v1221_v4  ;;  %v409_v35 = vmul.f32 0.41421357, %v1239_v12  ;;  %359 = vst [vmem:[#allocation8 + $0x8] sm:$0xff] %v315_v53  ;;  %v432_v14 = vsub.f32 0.0, %v1221_v4 }
 0x143   :  { %v319_v39 = vsel %vm318_vm6, %v1183_v61, %v317_v20  ;;  %v338_v19 = vmul.f32 %v872_v58, %v1124_v40  ;;  %vm1378_vm5 = vmxor %vm1999_vm12, %vm1021_vm3  ;;  %v410_v18 = vmul.f32 0.41421357, %v1135_v44  ;;  %v1384_v27 = vmul.f32 0.41421357, %v1167_v56 }
 0x144   :  { %v874_v31 = vpop.eup %873  ;;  %v322_v0 = vsel %vm320_vm7, %v321_v24, %v319_v39  ;;  %v326_v53 = vsel %vm325_vm8, %v1223_v5, %v324_v3  ;;  %vm1396_vm6 = vmxor %vm1998_vm11, %vm1021_vm3  ;;  %v1401_v49 = vmul.f32 0.41421357, %v1229_v9  ;;  %v2064_v61 = vand.u32 2147483648, %v1223_v5 }
 0x145   :  { %v345_v20 = vmul.f32 %v874_v31, %v1185_v62  ;;  %v876_v36 = vpop.eup %875  ;;  %vm2065_vm7 = vcmp.eq.f32.partialorder %v1223_v5, 0.0  ;;  %vm2066_vm8 = vcmp.eq.f32.partialorder %v1124_v40, inf  ;;  %360 = vst [vmem:[#allocation8 + $0x10] sm:$0xff] %v322_v0  ;;  %vm1414_vm11 = vmxor %vm2000_vm10, %vm1021_vm3  ;;  %v413_v39 = vmul.f32 0.41421357, %v1242_v13 }
 0x146   :  { %v329_v24 = vsel %vm2065_vm7, %v2064_v61, %v326_v53  ;;  %v340_v31 = vsel %vm2066_vm8, %v1124_v40, %v338_v19  ;;  %vm414_vm12 = vcmp.gt.f32.partialorder %v1138_v45, %v406_v28  ;;  %v2069_v5 = vand.u32 2147483648, %v1124_v40  ;;  %vm1432_vm10 = vmxor %vm2004_vm9, %vm1021_vm3 }
 0x147   :  { %vm2070_vm7 = vcmp.eq.f32.partialorder %v1124_v40, 0.0  ;;  %vm2071_vm8 = vcmp.eq.f32.partialorder %v1185_v62, inf  ;;  %v352_v53 = vmul.f32 %v876_v36, %v1225_v6  ;;  %361 = vst [vmem:[#allocation8 + $0x18] sm:$0xff] %v329_v24  ;;  %vm415_vm2 = vcmp.gt.f32.partialorder %v1170_v57, %v407_v33  ;;  %vm1446_vm3 = vmand %vm1322_vm13, %vm414_vm12 }
 0x148   :  { %v343_v19 = vsel %vm2070_vm7, %v2069_v5, %v340_v31  ;;  %v347_v0 = vsel %vm2071_vm8, %v1185_v62, %v345_v20  ;;  %v2074_v40 = vand.u32 2147483648, %v1185_v62  ;;  %vm2075_vm7 = vcmp.eq.f32.partialorder %v1185_v62, 0.0  ;;  %vm1462_vm13 = vmand %vm1339_vm14, %vm415_vm2 }
 0x149   :  { %363 = vst [vmem:[#allocation8 + $0x28] sm:$0xff] %v343_v19  ;;  %vm416_vm8 = vcmp.gt.f32.partialorder %v1232_v10, %v408_v37  ;;  %vm417_vm1 = vcmp.gt.f32.partialorder %v1247_v16, %v409_v35  ;;  %vm2078_vm9 = vcmp.eq.f32.partialorder %v1225_v6, inf  ;;  %vm420_vm0 = vcmp.gt.f32.partialorder %v1235_v11, %v1401_v49 }
 0x14a   :  { %v350_v28 = vsel %vm2075_vm7, %v2074_v40, %v347_v0  ;;  %v354_v33 = vsel %vm2078_vm9, %v1225_v6, %v352_v53  ;;  %vm421_vm12 = vcmp.gt.f32.partialorder %v1250_v17, %v413_v39  ;;  %v2081_v37 = vand.u32 2147483648, %v1225_v6  ;;  %vm1472_vm7 = vmand %vm1351_vm15, %vm416_vm8 }
 0x14b   :  { %364 = vst [vmem:[#allocation8 + $0x30] sm:$0xff] %v350_v28  ;;  %vm2082_vm9 = vcmp.eq.f32.partialorder %v1225_v6, 0.0  ;;  %v430_v24 = vsub.f32 0.0, %v1127_v41  ;;  %v431_v31 = vsub.f32 0.0, %v1154_v51  ;;  %vm1483_vm14 = vmand %vm1364_vm4, %vm417_vm1  ;;  %v433_v23 = vsub.f32 0.0, %v1239_v12 }
 0x14c   :  { %v357_v7 = vsel %vm2082_vm9, %v2081_v37, %v354_v33  ;;  %v434_v5 = vsub.f32 0.0, %v1135_v44  ;;  %v435_v19 = vsub.f32 0.0, %v1167_v56  ;;  %v436_v0 = vsub.f32 0.0, %v1229_v9 }
 0x14d   :  { %365 = vst [vmem:[#allocation8 + $0x38] sm:$0xff] %v357_v7 }
 0x14e   :  { %970 = shalt.err (!%p967_p0)
}
 0x14f   :  { %s971_s7 = scalar_lea.hbm %s1989_s3, 1024 }
 0x150   :  { %p972_p1 = scmp.ne.s32.totalorder %s1989_s3, %s971_s7  ;;  %p975_p2 = scmp.lt.u32.totalorder %s971_s7, %s1989_s3 }
 0x152   :  { %p977_p3 = pnand %p975_p2, %p972_p1 }
 0x154   :  { %980 = shalt.err (!%p977_p3)
}
 0x155   :  { %741 = dma.vmem_to_hbm [thread:$0]  %s1453_s29, 1024, %s1989_s3, [#allocation9], %s1015_s0, %s1015_s0, %s1016_s13   ;;  %vm2087_vm15 = vcmp.gt.f32.partialorder %v1151_v50, %v410_v18  ;;  %v437_v8 = vsub.f32 0.0, %v1242_v13  ;;  %v439_v53 = vsub.f32 %v1170_v57, %v1154_v51  ;;  %v440_v40 = vsub.f32 %v1232_v10, %v1221_v4 }
 0x156   :  { %vm1515_vm1 = vmand %vm1378_vm5, %vm2087_vm15  ;;  %v441_v28 = vsub.f32 %v1247_v16, %v1239_v12  ;;  %vm2090_vm2 = vcmp.gt.f32.partialorder %v1181_v60, %v1384_v27  ;;  %v442_v18 = vsub.f32 %v1151_v50, %v1135_v44  ;;  %v443_v33 = vsub.f32 %v1181_v60, %v1167_v56  ;;  %s1024_s3 = smov [#allocation10]  }
 0x157   :  { %vm1531_vm4 = vmand %vm1396_vm6, %vm2090_vm2  ;;  %v444_v37 = vsub.f32 %v1235_v11, %v1229_v9  ;;  %v445_v7 = vsub.f32 %v1250_v17, %v1242_v13  ;;  %v2095_v58 = vsub.f32 %v1138_v45, %v1127_v41  ;;  %v447_v59 = vsel %vm1462_vm13, %v439_v53, %v1170_v57  ;;  %s747_s15 = sshll.u32 %s1024_s3, 4  ;;  %s748_s15 = int_to_ptr.vmem [resolvable:$true] %s747_s15 }
 0x158   :  { %vm1548_vm5 = vmand %vm1414_vm11, %vm420_vm0  ;;  %v448_v49 = vsel %vm1472_vm7, %v440_v40, %v1232_v10  ;;  %v449_v3 = vsel %vm1483_vm14, %v441_v28, %v1247_v16  ;;  %v450_v53 = vsel %vm1515_vm1, %v442_v18, %v1151_v50  ;;  %v451_v40 = vsel %vm1531_vm4, %v443_v33, %v1181_v60  ;;  %s981_s1 = scalar_lea.vmem %s748_s15, 1024  ;;  %p986_p5 = scmp.lt.s32.totalorder %s748_s15, %s748_s15 }
 0x159   :  { %v446_v26 = vsel %vm1446_vm3, %v2095_v58, %v1138_v45  ;;  %vm1571_vm11 = vmand %vm1432_vm10, %vm421_vm12  ;;  %v452_v28 = vsel %vm1548_vm5, %v444_v37, %v1235_v11  ;;  %vm2098_vm0 = vcmp.gt.f32.partialorder %v1138_v45, %v1280_v38  ;;  %vm2099_vm10 = vcmp.gt.f32.partialorder %v1170_v57, %v1283_v46  ;;  %p982_p4 = scmp.ne.s32.totalorder %s748_s15, %s981_s1  ;;  %p987_p6 = scmp.lt.s32.totalorder %s981_s1, %s981_s1 }
 0x15a   :  { %v1587_v39 = vsel %vm2098_vm0, %v430_v24, %v446_v26  ;;  %v453_v61 = vsel %vm1571_vm11, %v445_v7, %v1250_v17  ;;  %v1595_v18 = vsel %vm2099_vm10, %v431_v31, %v447_v59  ;;  %vm2100_vm6 = vcmp.gt.f32.partialorder %v1232_v10, %v1288_v47 }
 0x15b   :  { %v1600_v33 = vsel %vm2100_vm6, %v432_v14, %v448_v49  ;;  %vm2101_vm8 = vcmp.gt.f32.partialorder %v1247_v16, %v1291_v34  ;;  %vm2102_vm12 = vcmp.gt.f32.partialorder %v1151_v50, %v1294_v52  ;;  %vm2103_vm9 = vcmp.gt.f32.partialorder %v1181_v60, %v1300_v63  ;;  %p988_p7 = por %p987_p6, %p986_p5 }
 0x15c   :  { %v1605_v37 = vsel %vm2101_vm8, %v433_v23, %v449_v3  ;;  %v1610_v26 = vsel %vm2102_vm12, %v434_v5, %v450_v53  ;;  %v1615_v59 = vsel %vm2103_vm9, %v435_v19, %v451_v40  ;;  %vm2104_vm15 = vcmp.gt.f32.partialorder %v1235_v11, %v1303_v1 }
 0x15d   :  { %v1620_v24 = vsel %vm2104_vm15, %v436_v0, %v452_v28  ;;  %vm2105_vm2 = vcmp.gt.f32.partialorder %v1250_v17, %v1306_v2  ;;  %v462_v14 = vadd.f32 %v1138_v45, %v1127_v41  ;;  %v463_v23 = vadd.f32 %v1170_v57, %v1154_v51  ;;  %p989_p8 = pnand %p988_p7, %p982_p4 }
 0x15e   :  { %v1625_v31 = vsel %vm2105_vm2, %v437_v8, %v453_v61  ;;  %v464_v5 = vadd.f32 %v1232_v10, %v1221_v4  ;;  %v465_v19 = vadd.f32 %v1247_v16, %v1239_v12  ;;  %v466_v0 = vadd.f32 %v1151_v50, %v1135_v44 }
 0x15f   :  { %v467_v7 = vadd.f32 %v1181_v60, %v1167_v56  ;;  %v468_v8 = vadd.f32 %v1235_v11, %v1229_v9  ;;  %v469_v58 = vadd.f32 %v1250_v17, %v1242_v13  ;;  %v470_v49 = vsel %vm1446_vm3, %v462_v14, %v1127_v41 }
 0x160   :  { %v471_v3 = vsel %vm1462_vm13, %v463_v23, %v1154_v51  ;;  %v472_v53 = vsel %vm1472_vm7, %v464_v5, %v1221_v4  ;;  %v473_v40 = vsel %vm1483_vm14, %v465_v19, %v1239_v12  ;;  %v474_v28 = vsel %vm1515_vm1, %v466_v0, %v1135_v44 }
 0x161   :  { %v475_v61 = vsel %vm1531_vm4, %v467_v7, %v1167_v56  ;;  %v476_v14 = vsel %vm1548_vm5, %v468_v8, %v1229_v9  ;;  %v477_v23 = vsel %vm1571_vm11, %v469_v58, %v1242_v13  ;;  %v478_v5 = vsel %vm2098_vm0, %v1138_v45, %v470_v49 }
 0x162   :  { %v479_v19 = vsel %vm2099_vm10, %v1170_v57, %v471_v3  ;;  %v480_v0 = vsel %vm2100_vm6, %v1232_v10, %v472_v53  ;;  %v481_v7 = vsel %vm2101_vm8, %v1247_v16, %v473_v40  ;;  %v482_v8 = vsel %vm2102_vm12, %v1151_v50, %v474_v28 }
 0x163   :  { %v483_v58 = vsel %vm2103_vm9, %v1181_v60, %v475_v61  ;;  %v484_v49 = vsel %vm2104_vm15, %v1235_v11, %v476_v14  ;;  %v485_v3 = vsel %vm2105_vm2, %v1250_v17, %v477_v23  ;;  %v1023_v53 = vmov 0.0  }
 0x164   :  { %v486_v40 = vsel %vm1446_vm3, 0.7853982, %v1023_v53  ;;  %v487_v28 = vsel %vm1462_vm13, 0.7853982, %v1023_v53  ;;  %v488_v61 = vsel %vm1472_vm7, 0.7853982, %v1023_v53  ;;  %vm2106_vm3 = vmmov %vm2098_vm0 }
 0x165   :  { %v489_v14 = vsel %vm1483_vm14, 0.7853982, %v1023_v53  ;;  %v490_v23 = vsel %vm1515_vm1, 0.7853982, %v1023_v53  ;;  %v491_v36 = vsel %vm1531_vm4, 0.7853982, %v1023_v53  ;;  %vm2107_vm7 = vmmov %vm2099_vm10 }
 0x166   :  { %v492_v62 = vsel %vm1548_vm5, 0.7853982, %v1023_v53  ;;  %v493_v20 = vsel %vm1571_vm11, 0.7853982, %v1023_v53  ;;  %v1726_v6 = vsel %vm2106_vm3, 1.5707964, %v486_v40  ;;  %vm2108_vm13 = vmmov %vm2100_vm6 }
 0x167   :  { %v1731_v35 = vsel %vm2107_vm7, 1.5707964, %v487_v28  ;;  %v1736_v15 = vsel %vm2108_vm13, 1.5707964, %v488_v61  ;;  %vm2109_vm14 = vmmov %vm2101_vm8  ;;  %vm502_vm0 = vcmp.gt.f32.partialorder %v478_v5, 0.0  ;;  %vm503_vm10 = vcmp.gt.f32.partialorder %v479_v19, 0.0 }
 0x168   :  { %v1741_v48 = vsel %vm2109_vm14, 1.5707964, %v489_v14  ;;  %vm2110_vm1 = vmmov %vm2102_vm12  ;;  %vm504_vm6 = vcmp.gt.f32.partialorder %v480_v0, 0.0  ;;  %vm505_vm8 = vcmp.gt.f32.partialorder %v481_v7, 0.0  ;;  %vm506_vm12 = vcmp.gt.f32.partialorder %v482_v8, 0.0 }
 0x169   :  { %v1746_v38 = vsel %vm2110_vm1, 1.5707964, %v490_v23  ;;  %vm2111_vm4 = vmmov %vm2103_vm9  ;;  %v510_v52 = vsel %vm502_vm0, %v478_v5, 1.0  ;;  %v511_v27 = vsel %vm503_vm10, %v479_v19, 1.0  ;;  %vm507_vm9 = vcmp.gt.f32.partialorder %v483_v58, 0.0 }
 0x16a   :  { %v1751_v46 = vsel %vm2111_vm4, 1.5707964, %v491_v36  ;;  %vm2112_vm5 = vmmov %vm2104_vm15  ;;  %v512_v63 = vsel %vm504_vm6, %v480_v0, 1.0  ;;  %vm508_vm15 = vcmp.gt.f32.partialorder %v484_v49, 0.0  ;;  %v513_v40 = vsel %vm505_vm8, %v481_v7, 1.0 }
 0x16b   :  { %v1756_v47 = vsel %vm2112_vm5, 1.5707964, %v492_v62  ;;  %vm2113_vm11 = vmmov %vm2105_vm2  ;;  %877 = vrcp.f32 %v510_v52  ;;  %vm509_vm2 = vcmp.gt.f32.partialorder %v485_v3, 0.0  ;;  %v514_v1 = vsel %vm506_vm12, %v482_v8, 1.0 }
 0x16c   :  { %v1761_v34 = vsel %vm2113_vm11, 1.5707964, %v493_v20  ;;  %879 = vrcp.f32 %v511_v27  ;;  %v515_v28 = vsel %vm507_vm9, %v483_v58, 1.0  ;;  %v516_v2 = vsel %vm508_vm15, %v484_v49, 1.0 }
 0x16d   :  { %2114 = vst [vmem:[#allocation34_spill] sm:$0xff] %v1761_v34  ;;  %881 = vrcp.f32 %v512_v63  ;;  %v517_v61 = vsel %vm509_vm2, %v485_v3, 1.0  ;;  %vm622_vm3 = vcmp.lt.f32.partialorder %v1077_v21, 0.0  ;;  %vm623_vm7 = vcmp.lt.f32.partialorder %v1097_v29, 0.0 }
 0x16e   :  { %883 = vrcp.f32 %v513_v40  ;;  %vm624_vm13 = vcmp.lt.f32.partialorder %v1129_v42, 0.0  ;;  %vm625_vm14 = vcmp.lt.f32.partialorder %v1162_v54, 0.0  ;;  %vm626_vm1 = vcmp.lt.f32.partialorder %v1079_v22, 0.0 }
 0x16f   :  { %885 = vrcp.f32 %v514_v1  ;;  %vm627_vm4 = vcmp.lt.f32.partialorder %v1099_v30, 0.0  ;;  %vm2032_vm5 = vcmp.lt.f32.partialorder %v1131_v43, 0.0  ;;  %vm2031_vm11 = vcmp.lt.f32.partialorder %v1164_v55, 0.0 }
 0x170   :  { %887 = vrcp.f32 %v515_v28  ;;  %v1780_v58 = vsel %vm622_vm3, 3.1415927, %v1023_v53  ;;  %v1795_v14 = vsel %vm624_vm13, 3.1415927, %v1023_v53  ;;  %v1800_v23 = vsel %vm625_vm14, 3.1415927, %v1023_v53 }
 0x171   :  { %889 = vrcp.f32 %v516_v2  ;;  %2115 = vst [vmem:[#allocation35_spill] sm:$0xff] %v1780_v58  ;;  %2117 = vst [vmem:[#allocation37_spill] sm:$0xff] %v1795_v14  ;;  %v1810_v20 = vsel %vm626_vm1, 3.1415927, %v1023_v53  ;;  %v1815_v52 = vsel %vm627_vm4, 3.1415927, %v1023_v53 }
 0x172   :  { %891 = vrcp.f32 %v517_v61  ;;  %2118 = vst [vmem:[#allocation38_spill] sm:$0xff] %v1800_v23  ;;  %2119 = vst [vmem:[#allocation39_spill] sm:$0xff] %v1810_v20  ;;  %v1825_v1 = vsel %vm2032_vm5, 3.1415927, %v1023_v53  ;;  %vm646_vm0 = vcmp.eq.f32.partialorder %v1127_v41, 0.0  ;;  %vm647_vm10 = vcmp.eq.f32.partialorder %v1154_v51, 0.0 }
 0x173   :  { %2120 = vst [vmem:[#allocation40_spill] sm:$0xff] %v1815_v52  ;;  %2121 = vst [vmem:[#allocation41_spill] sm:$0xff] %v1825_v1  ;;  %vm648_vm6 = vcmp.eq.f32.partialorder %v1221_v4, 0.0  ;;  %vm649_vm8 = vcmp.eq.f32.partialorder %v1239_v12, 0.0  ;;  %vm663_vm9 = vcmp.lt.f32.partialorder %v1105_v32, 0.0  ;;  %vm686_vm12 = vcmp.eq.f32.partialorder %v1138_v45, 0.0 }
 0x174   :  { %v2133_v29 = vld [vmem:[#allocation34_spill] sm:$0xff]  ;;  %v2137_v41 = vld [vmem:[#allocation31_spill] sm:$0xff] }
 0x175   :  { %v878_v5 = vpop.eup %877 }
 0x176   :  { %v880_v19 = vpop.eup %879  ;;  %v1768_v0 = vmul.f32 %v878_v5, %v1587_v39  ;;  %v1785_v39 = vsel %vm623_vm7, 3.1415927, %v1023_v53 }
 0x177   :  { %v882_v7 = vpop.eup %881  ;;  %v1774_v8 = vmul.f32 %v880_v19, %v1595_v18  ;;  %2116 = vst [vmem:[#allocation36_spill] sm:$0xff] %v1785_v39 }
 0x178   :  { %v884_v49 = vpop.eup %883  ;;  %v1788_v3 = vmul.f32 %v882_v7, %v1600_v33  ;;  %v534_v18 = vmul.f32 %v1768_v0, %v1768_v0 }
 0x179   :  { %v886_v36 = vpop.eup %885  ;;  %v1803_v62 = vmul.f32 %v884_v49, %v1605_v37  ;;  %v535_v33 = vmul.f32 %v1774_v8, %v1774_v8 }
 0x17a   :  { %v888_v27 = vpop.eup %887  ;;  %v1818_v63 = vmul.f32 %v886_v36, %v1610_v26  ;;  %v536_v37 = vmul.f32 %v1788_v3, %v1788_v3  ;;  %v542_v40 = vmul.f32 0.080537446, %v534_v18  ;;  %v1835_v26 = vsel %vm2031_vm11, 3.1415927, %v1023_v53 }
 0x17b   :  { %v890_v28 = vpop.eup %889  ;;  %v1828_v2 = vmul.f32 %v888_v27, %v1615_v59  ;;  %v537_v61 = vmul.f32 %v1803_v62, %v1803_v62  ;;  %v543_v5 = vmul.f32 0.080537446, %v535_v33  ;;  %2122 = vst [vmem:[#allocation42_spill] sm:$0xff] %v1835_v26 }
 0x17c   :  { %v892_v19 = vpop.eup %891  ;;  %v1838_v7 = vmul.f32 %v890_v28, %v1620_v24  ;;  %v538_v49 = vmul.f32 %v1818_v63, %v1818_v63  ;;  %v544_v36 = vmul.f32 0.080537446, %v536_v37  ;;  %v787_v1 = vadd.f32 -0.13877685, %v542_v40 }
 0x17d   :  { %v1843_v59 = vmul.f32 %v892_v19, %v1625_v31  ;;  %v539_v27 = vmul.f32 %v1828_v2, %v1828_v2  ;;  %v545_v52 = vmul.f32 0.080537446, %v537_v61  ;;  %v788_v20 = vadd.f32 -0.13877685, %v543_v5 }
 0x17e   :  { %v540_v53 = vmul.f32 %v1838_v7, %v1838_v7  ;;  %v546_v26 = vmul.f32 0.080537446, %v538_v49  ;;  %v789_v23 = vadd.f32 -0.13877685, %v544_v36  ;;  %v558_v24 = vmul.f32 %v787_v1, %v534_v18 }
 0x17f   :  { %v541_v28 = vmul.f32 %v1843_v59, %v1843_v59  ;;  %v547_v14 = vmul.f32 0.080537446, %v539_v27  ;;  %v790_v39 = vadd.f32 -0.13877685, %v545_v52  ;;  %v559_v40 = vmul.f32 %v788_v20, %v535_v33 }
 0x180   :  { %v548_v58 = vmul.f32 0.080537446, %v540_v53  ;;  %v791_v31 = vadd.f32 -0.13877685, %v546_v26  ;;  %v560_v19 = vmul.f32 %v789_v23, %v536_v37  ;;  %v566_v55 = vadd.f32 0.19977711, %v558_v24 }
 0x181   :  { %v549_v43 = vmul.f32 0.080537446, %v541_v28  ;;  %v792_v30 = vadd.f32 -0.13877685, %v547_v14  ;;  %v561_v22 = vmul.f32 %v790_v39, %v537_v61  ;;  %v567_v5 = vadd.f32 0.19977711, %v559_v40 }
 0x182   :  { %v793_v17 = vadd.f32 -0.13877685, %v548_v58  ;;  %v562_v11 = vmul.f32 %v791_v31, %v538_v49  ;;  %v568_v60 = vadd.f32 0.19977711, %v560_v19  ;;  %v574_v50 = vmul.f32 %v566_v55, %v534_v18 }
 0x183   :  { %v794_v36 = vadd.f32 -0.13877685, %v549_v43  ;;  %v563_v1 = vmul.f32 %v792_v30, %v539_v27  ;;  %v569_v54 = vadd.f32 0.19977711, %v561_v22  ;;  %v575_v34 = vmul.f32 %v567_v5, %v535_v33 }
 0x184   :  { %v564_v16 = vmul.f32 %v793_v17, %v540_v53  ;;  %v570_v10 = vadd.f32 0.19977711, %v562_v11  ;;  %v576_v52 = vmul.f32 %v568_v60, %v536_v37  ;;  %v795_v20 = vadd.f32 -0.3333295, %v574_v50 }
 0x185   :  { %v565_v57 = vmul.f32 %v794_v36, %v541_v28  ;;  %v571_v26 = vadd.f32 0.19977711, %v563_v1  ;;  %v577_v23 = vmul.f32 %v569_v54, %v537_v61  ;;  %v796_v24 = vadd.f32 -0.3333295, %v575_v34 }
 0x186   :  { %v572_v42 = vadd.f32 0.19977711, %v564_v16  ;;  %v578_v14 = vmul.f32 %v570_v10, %v538_v49  ;;  %v797_v39 = vadd.f32 -0.3333295, %v576_v52  ;;  %v590_v40 = vmul.f32 %v795_v20, %v534_v18 }
 0x187   :  { %v573_v58 = vadd.f32 0.19977711, %v565_v57  ;;  %v579_v31 = vmul.f32 %v571_v26, %v539_v27  ;;  %v798_v19 = vadd.f32 -0.3333295, %v577_v23  ;;  %v591_v55 = vmul.f32 %v796_v24, %v535_v33  ;;  %v2123_v26 = vld [vmem:[#allocation21_spill] sm:$0xff] }
 0x188   :  { %v580_v43 = vmul.f32 %v572_v42, %v540_v53  ;;  %v799_v30 = vadd.f32 -0.3333295, %v578_v14  ;;  %v592_v22 = vmul.f32 %v797_v39, %v536_v37  ;;  %v598_v17 = vmul.f32 %v590_v40, %v1768_v0  ;;  %v2127_v39 = vld [vmem:[#allocation22_spill] sm:$0xff] }
 0x189   :  { %v581_v11 = vmul.f32 %v573_v58, %v541_v28  ;;  %v800_v60 = vadd.f32 -0.3333295, %v579_v31  ;;  %v593_v50 = vmul.f32 %v798_v19, %v537_v61  ;;  %v599_v5 = vmul.f32 %v591_v55, %v1774_v8 }
 0x18a   :  { %v801_v54 = vadd.f32 -0.3333295, %v580_v43  ;;  %v594_v10 = vmul.f32 %v799_v30, %v538_v49  ;;  %v600_v16 = vmul.f32 %v592_v22, %v1788_v3  ;;  %v606_v57 = vadd.f32 %v598_v17, %v1768_v0  ;;  %v2132_v22 = vld [vmem:[#allocation32_spill] sm:$0xff] }
 0x18b   :  { %v802_v42 = vadd.f32 -0.3333295, %v581_v11  ;;  %v595_v34 = vmul.f32 %v800_v60, %v539_v27  ;;  %v601_v18 = vmul.f32 %v593_v50, %v1803_v62  ;;  %v607_v33 = vadd.f32 %v599_v5, %v1774_v8  ;;  %v2135_v5 = vld [vmem:[#allocation23_spill] sm:$0xff] }
 0x18c   :  { %v596_v37 = vmul.f32 %v801_v54, %v540_v53  ;;  %v602_v61 = vmul.f32 %v594_v10, %v1818_v63  ;;  %v608_v49 = vadd.f32 %v600_v16, %v1788_v3  ;;  %v614_v36 = vadd.f32 %v606_v57, %v1726_v6  ;;  %v2136_v54 = vld [vmem:[#allocation28_spill] sm:$0xff]  ;;  %v2138_v10 = vld [vmem:[#allocation33_spill] sm:$0xff] }
 0x18d   :  { %v597_v0 = vmul.f32 %v802_v42, %v541_v28  ;;  %v603_v27 = vmul.f32 %v595_v34, %v1828_v2  ;;  %v609_v1 = vadd.f32 %v601_v18, %v1803_v62  ;;  %v615_v8 = vadd.f32 %v607_v33, %v1731_v35 }
 0x18e   :  { %v604_v52 = vmul.f32 %v596_v37, %v1838_v7  ;;  %v610_v53 = vadd.f32 %v602_v61, %v1818_v63  ;;  %v616_v20 = vadd.f32 %v608_v49, %v1736_v15  ;;  %v630_v3 = vsub.f32 3.1415927, %v614_v36  ;;  %v2124_v63 = vld [vmem:[#allocation27_spill] sm:$0xff] }
 0x18f   :  { %v605_v6 = vmul.f32 %v597_v0, %v1843_v59  ;;  %v611_v28 = vadd.f32 %v603_v27, %v1828_v2  ;;  %v617_v62 = vadd.f32 %v609_v1, %v1741_v48  ;;  %v631_v35 = vsub.f32 3.1415927, %v615_v8  ;;  %v2125_v2 = vld [vmem:[#allocation16_spill] sm:$0xff]  ;;  %v2126_v48 = vld [vmem:[#allocation18_spill] sm:$0xff] }
 0x190   :  { %v612_v15 = vadd.f32 %v604_v52, %v1838_v7  ;;  %v618_v23 = vadd.f32 %v610_v53, %v1746_v38  ;;  %v632_v24 = vsub.f32 3.1415927, %v616_v20  ;;  %v638_v14 = vsel %vm622_vm3, %v630_v3, %v614_v36  ;;  %v2128_v38 = vld [vmem:[#allocation29_spill] sm:$0xff]  ;;  %v2142_v36 = vld [vmem:[#allocation20_spill] sm:$0xff] }
 0x191   :  { %vm666_vm2 = vcmp.lt.f32.partialorder %v2125_v2, 0.0  ;;  %v613_v40 = vadd.f32 %v605_v6, %v1843_v59  ;;  %v619_v58 = vadd.f32 %v611_v28, %v1751_v46  ;;  %v633_v31 = vsub.f32 3.1415927, %v617_v62  ;;  %v2130_v59 = vld [vmem:[#allocation26_spill] sm:$0xff] }
 0x192   :  { %v639_v7 = vsel %vm623_vm7, %v631_v35, %v615_v8  ;;  %vm669_vm5 = vcmp.lt.f32.partialorder %v2128_v38, 0.0  ;;  %v620_v21 = vadd.f32 %v612_v15, %v1756_v47  ;;  %v634_v19 = vsub.f32 3.1415927, %v618_v23  ;;  %v2131_v46 = vld [vmem:[#allocation30_spill] sm:$0xff]  ;;  %v2145_v8 = vld [vmem:[#allocation25_spill] sm:$0xff] }
 0x193   :  { %v640_v43 = vsel %vm624_vm13, %v632_v24, %v616_v20  ;;  %v654_v30 = vsel %vm646_vm0, 1.5707964, %v638_v14  ;;  %vm688_vm11 = vcmp.eq.f32.partialorder %v2131_v46, 0.0  ;;  %vm689_vm15 = vcmp.eq.f32.partialorder %v2132_v22, 0.0  ;;  %v2155_v24 = vld [vmem:[#allocation36_spill] sm:$0xff]  ;;  %v2157_v14 = vld [vmem:[#allocation37_spill] sm:$0xff] }
 0x194   :  { %v621_v17 = vadd.f32 %v613_v40, %v2133_v29  ;;  %v635_v11 = vsub.f32 3.1415927, %v619_v58  ;;  %v641_v50 = vsel %vm625_vm14, %v633_v31, %v617_v62  ;;  %v655_v47 = vsel %vm647_vm10, 1.5707964, %v639_v7  ;;  %v2159_v40 = vld [vmem:[#allocation39_spill] sm:$0xff]  ;;  %v2161_v7 = vld [vmem:[#allocation41_spill] sm:$0xff] }
 0x195   :  { %vm690_vm7 = vcmp.eq.f32.partialorder %v2135_v5, 0.0  ;;  %vm691_vm13 = vcmp.eq.f32.partialorder %v2136_v54, 0.0  ;;  %vm692_vm0 = vcmp.eq.f32.partialorder %v2137_v41, 0.0  ;;  %v636_v16 = vsub.f32 3.1415927, %v620_v21 }
 0x196   :  { %v642_v42 = vsel %vm626_vm1, %v634_v19, %v618_v23  ;;  %v656_v34 = vsel %vm648_vm6, 1.5707964, %v640_v43  ;;  %v657_v18 = vsel %vm649_vm8, 1.5707964, %v641_v50  ;;  %v637_v51 = vsub.f32 3.1415927, %v621_v17 }
 0x197   :  { %v643_v37 = vsel %vm627_vm4, %v635_v11, %v619_v58  ;;  %vm2141_vm14 = vcmp.eq.f32.partialorder %v1135_v44, 0.0  ;;  %v670_v49 = vsub.f32 0.0, %v654_v30  ;;  %vm2143_vm10 = vcmp.lt.f32.partialorder %v2142_v36, 0.0  ;;  %v2154_v23 = vld [vmem:[#allocation35_spill] sm:$0xff]  ;;  %v2160_v58 = vld [vmem:[#allocation40_spill] sm:$0xff] }
 0x198   :  { %v658_v61 = vsel %vm2141_vm14, 1.5707964, %v642_v42  ;;  %v644_v0 = vsel %vm2143_vm10, %v636_v16, %v620_v21  ;;  %vm2144_vm3 = vcmp.eq.f32.partialorder %v1167_v56, 0.0  ;;  %v671_v1 = vsub.f32 0.0, %v655_v47  ;;  %v2162_v21 = vld [vmem:[#allocation42_spill] sm:$0xff] }
 0x199   :  { %v659_v27 = vsel %vm2144_vm3, 1.5707964, %v643_v37  ;;  %v672_v4 = vsub.f32 0.0, %v656_v34  ;;  %vm2146_vm1 = vcmp.lt.f32.partialorder %v2145_v8, 0.0  ;;  %vm2147_vm6 = vcmp.eq.f32.partialorder %v1229_v9, 0.0 }
 0x19a   :  { %v645_v12 = vsel %vm2146_vm1, %v637_v51, %v621_v17  ;;  %v660_v52 = vsel %vm2147_vm6, 1.5707964, %v644_v0  ;;  %v673_v53 = vsub.f32 0.0, %v657_v18  ;;  %v674_v20 = vsub.f32 0.0, %v658_v61 }
 0x19b   :  { %vm2148_vm4 = vcmp.eq.f32.partialorder %v1242_v13, 0.0  ;;  %v675_v3 = vsub.f32 0.0, %v659_v27  ;;  %v676_v6 = vsub.f32 0.0, %v660_v52  ;;  %vm2149_vm8 = vcmp.lt.f32.partialorder %v1087_v25, 0.0 }
 0x19c   :  { %v661_v44 = vsel %vm2148_vm4, 1.5707964, %v645_v12  ;;  %v678_v28 = vsel %vm2149_vm8, %v670_v49, %v654_v30  ;;  %v679_v62 = vsel %vm663_vm9, %v671_v1, %v655_v47  ;;  %vm2150_vm3 = vcmp.lt.f32.partialorder %v2123_v26, 0.0 }
 0x19d   :  { %v677_v56 = vsub.f32 0.0, %v661_v44  ;;  %v680_v9 = vsel %vm2150_vm3, %v672_v4, %v656_v34  ;;  %vm2151_vm14 = vcmp.lt.f32.partialorder %v2124_v63, 0.0  ;;  %v682_v13 = vsel %vm666_vm2, %v674_v20, %v658_v61 }
 0x19e   :  { %v681_v35 = vsel %vm2151_vm14, %v673_v53, %v657_v18  ;;  %vm2152_vm10 = vcmp.lt.f32.partialorder %v2126_v48, 0.0  ;;  %vm2153_vm1 = vcmp.lt.f32.partialorder %v2127_v39, 0.0  ;;  %v702_v32 = vsel %vm686_vm12, %v2154_v23, %v678_v28  ;;  %v2158_v48 = vld [vmem:[#allocation38_spill] sm:$0xff] }
 0x19f   :  { %v683_v15 = vsel %vm2152_vm10, %v675_v3, %v659_v27  ;;  %v684_v25 = vsel %vm2153_vm1, %v676_v6, %v660_v52  ;;  %v685_v26 = vsel %vm669_vm5, %v677_v56, %v661_v44  ;;  %vm2156_vm9 = vcmp.eq.f32.partialorder %v2130_v59, 0.0  ;;  %710 = vst [vmem:[#allocation10] sm:$0xff] %v702_v32 }
 0x1a0   :  { %v703_v63 = vsel %vm2156_vm9, %v2155_v24, %v679_v62  ;;  %v704_v2 = vsel %vm688_vm11, %v2157_v14, %v680_v9  ;;  %v705_v39 = vsel %vm689_vm15, %v2158_v48, %v681_v35  ;;  %v706_v45 = vsel %vm690_vm7, %v2159_v40, %v682_v13 }
 0x1a1   :  { %v707_v31 = vsel %vm691_vm13, %v2160_v58, %v683_v15  ;;  %v708_v38 = vsel %vm692_vm0, %v2161_v7, %v684_v25  ;;  %vm2163_vm5 = vcmp.eq.f32.partialorder %v2138_v10, 0.0  ;;  %711 = vst [vmem:[#allocation10 + $0x8] sm:$0xff] %v703_v63  ;;  %712 = vst [vmem:[#allocation10 + $0x10] sm:$0xff] %v704_v2 }
 0x1a2   :  { %v709_v19 = vsel %vm2163_vm5, %v2162_v21, %v685_v26  ;;  %713 = vst [vmem:[#allocation10 + $0x18] sm:$0xff] %v705_v39  ;;  %714 = vst [vmem:[#allocation10 + $0x20] sm:$0xff] %v706_v45 }
 0x1a3   :  { %715 = vst [vmem:[#allocation10 + $0x28] sm:$0xff] %v707_v31  ;;  %716 = vst [vmem:[#allocation10 + $0x30] sm:$0xff] %v708_v38 }
 0x1a4   :  { %717 = vst [vmem:[#allocation10 + $0x38] sm:$0xff] %v709_v19 }
 0x1a5   :  { %992 = shalt.err (!%p989_p8)
}
 0x1a6   :  { %s993_s18 = scalar_lea.hbm %s1990_s4, 1024 }
 0x1a7   :  { %p994_p9 = scmp.ne.s32.totalorder %s1990_s4, %s993_s18  ;;  %p997_p10 = scmp.lt.u32.totalorder %s993_s18, %s1990_s4 }
 0x1a9   :  { %p999_p11 = pnand %p997_p10, %p994_p9 }
 0x1ab   :  { %1002 = shalt.err (!%p999_p11)
}
 0x1ac   :  { %753 = dma.vmem_to_hbm [thread:$0]  %s748_s15, 1024, %s1990_s4, [#allocation9], %s1015_s0, %s1015_s0, %s1016_s13  }
 0x1ad   :  { %1007 = dma.done.wait [#allocation4], 2048  }
 0x1ae   :  { %1008 = vsyncadd [#allocation4], 4294965248 }
 0x1af   :  { %1009 = dma.done.wait [#allocation9], 2048  }
 0x1b0   :  { %1010 = vsyncadd [#allocation9], 4294965248 }
 0x1b1   :  { %763 = vsyncpa [#allocation3], 1 }
 0x1b2   :  { %764 = vsyncpa [#allocation6], 1 }
 0x1b3   :  { %765 = vsyncpa [#allocation4], 1 }
 0x1b4   :  { %766 = vsyncpa [#allocation9], 1 }

</bundles_post_ra>
